<compile_context>
chip_gen: v7x
topology: tpu7x:2x2x1
jax: 0.10.0
libtpu: 0.0.40
codegen_flags: <defaults>
</compile_context>

<pallas_src>
import jax
import jax.numpy as jnp
from jax.experimental import pallas as pl
from jax.experimental.pallas import tpu as pltpu


# ---------------------------------------------------------------------------
# Fused kernel: all layers applied to one batch tile, activations stay in VMEM.
# ---------------------------------------------------------------------------
def _make_fused_mlp_kernel(num_layers, mm_dtype, ew_dtype):
    def kernel(x_ref, *refs):
        # refs = (Wt0, b0, Wt1, b1, ..., Wt_{L-1}, b_{L-1}, out_ref)
        out_ref = refs[-1]
        h = x_ref[...]                                   # already mm_dtype
        for li in range(num_layers):
            wt = refs[2 * li][...]                       # (d_in, d_out), normalized + T
            b = refs[2 * li + 1][...]                    # (1, d_out)
            y = jnp.dot(h, wt, preferred_element_type=jnp.float32)   # MXU, f32 acc
            if li != num_layers - 1:
                # Hidden layers: elementwise in ew_dtype (bf16 on v6e/v7x,
                # f32 on v5e); next dot consumes mm_dtype with no extra cast
                # when ew_dtype == mm_dtype.
                y = jnp.tanh(y.astype(ew_dtype) + b)
                h = y.astype(mm_dtype)
            else:
                # Final layer: keep f32 accumulator precision for the output.
                h = y + b
        out_ref[...] = h.astype(out_ref.dtype)

    return kernel


# ---------------------------------------------------------------------------
# Wrapper helpers.
# ---------------------------------------------------------------------------
def _normalize_and_transpose(W, c):
    """L-inf Lipschitz weight normalization, hoisted out of the kernel.

    Returns W_norm.T with shape (d_in, d_out) so the kernel contracts the
    natural last dim of x with the first dim of the weight (no per-tile
    transpose).
    """
    W = W.astype(jnp.float32)
    softplus_c = jax.nn.softplus(jnp.asarray(c, jnp.float32))
    absrowsum = jnp.sum(jnp.abs(W), axis=1, keepdims=True)     # (d_out, 1)
    scale = jnp.minimum(jnp.float32(1.0), softplus_c / absrowsum)
    return (W * scale).T                                        # (d_in, d_out)


def _ceil_to(v, m):
    return -(-v // m) * m


def _lane_padded_bytes(rows, cols, dtype):
    # Every VMEM block occupies whole (8, 128) tiles in the lane/sublane grid.
    return (_ceil_to(max(rows, 1), 8) * _ceil_to(max(cols, 1), 128)
            * jnp.dtype(dtype).itemsize)


def _choose_tiling(n_rows, block_rows):
    """Large multiple-of-16 batch tile + padded row count.

    Never falls back to tiny tiles (rows are padded instead), and keeps the
    grid step count even whenever it is > 1 so the "parallel" batch axis
    balances across v7x's two TensorCores.
    """
    if n_rows <= 16:
        return 16, 16
    tm = min(block_rows, _ceil_to(-(-n_rows // 2), 16))   # ceil(N/2): >=2 steps
    tm = max(16, _ceil_to(tm, 16))
    n_tiles = -(-n_rows // tm)
    if n_tiles > 1 and n_tiles % 2 == 1:
        n_tiles += 1                                       # even grid for 2 TCs
    return tm, n_tiles * tm


def _device_has_bf16_vpu():
    """True on v6e / v7x (bf16 VPU+EUP); False on v5e and older / unknown."""
    try:
        kind = jax.devices()[0].device_kind.lower()
    except Exception:
        return False
    return any(tag in kind for tag in ("v6", "v7", "7x"))


# ---------------------------------------------------------------------------
# Wrapper: one pallas_call tiling only the batch dimension.
# ---------------------------------------------------------------------------
def lipschitz_mlp_forward(params, x, *, block_rows=1024, use_bf16=True,
                          bf16_elementwise=None):
    """Replicates LipschitzMLP.forward.

    params: list of (W, b, c) with W: (d_out, d_in), b: (d_out,), c: scalar.
    x: (N, n_in) activations.
    Returns {"model_in": x, "model_out": (N, n_out)} with model_out in f32.
    """
    coords_org = x
    x32 = x.astype(jnp.float32)
    N, d_in = x32.shape
    num_layers = len(params)
    d_out = params[-1][0].shape[0]

    mm_dtype = jnp.bfloat16 if use_bf16 else jnp.float32
    if bf16_elementwise is None:
        bf16_elementwise = use_bf16 and _device_has_bf16_vpu()
    ew_dtype = jnp.bfloat16 if (use_bf16 and bf16_elementwise) else jnp.float32

    # --- batch tiling: pad rows up instead of shrinking the tile ----------
    tm, n_pad = _choose_tiling(N, block_rows)
    x_in = x32.astype(mm_dtype)
    if n_pad != N:
        x_in = jnp.pad(x_in, ((0, n_pad - N), (0, 0)))

    # --- lane-dense output: zero-pad last layer to a multiple of 128 ------
    d_out_pad = _ceil_to(d_out, 128)

    flat_inputs = [x_in]
    in_specs = [pl.BlockSpec((tm, d_in), lambda i: (i, 0))]
    vmem_bytes = _lane_padded_bytes(tm, d_in, mm_dtype)

    for li, (W, b, c) in enumerate(params):
        is_last = li == num_layers - 1
        Wt = _normalize_and_transpose(W, c)                 # (d_in_l, d_out_l)
        b2 = b.reshape(1, -1).astype(jnp.float32)           # (1, d_out_l)
        if is_last and d_out_pad != d_out:
            # Pad AFTER normalization (zero rows would make rowsum 0).
            Wt = jnp.pad(Wt, ((0, 0), (0, d_out_pad - d_out)))
            b2 = jnp.pad(b2, ((0, 0), (0, d_out_pad - d_out)))
        Wt = Wt.astype(mm_dtype)
        if not is_last:
            b2 = b2.astype(ew_dtype)                         # bf16 bias add on v6e/v7x
        di, do = Wt.shape
        flat_inputs += [Wt, b2]
        # Constant-index weight/bias blocks: fetched once, resident in VMEM.
        in_specs += [pl.BlockSpec((di, do), lambda i: (0, 0)),
                     pl.BlockSpec((1, do), lambda i: (0, 0))]
        vmem_bytes += _lane_padded_bytes(di, do, mm_dtype)
        vmem_bytes += _lane_padded_bytes(1, do, b2.dtype)

    vmem_bytes += _lane_padded_bytes(tm, d_out_pad, jnp.float32)   # output block
    vmem_bytes *= 2                                                # double buffering

    compiler_kwargs = dict(dimension_semantics=("parallel",))
    if vmem_bytes > (28 << 20):
        # Above the ~32 MiB scoped default; request more, but stay below
        # v7x's 64 MiB physical VMEM.
        compiler_kwargs["vmem_limit_bytes"] = min(int(vmem_bytes * 1.25), 60 << 20)

    kernel = _make_fused_mlp_kernel(num_layers, mm_dtype, ew_dtype)

    out = pl.pallas_call(
        kernel,
        out_shape=jax.ShapeDtypeStruct((n_pad, d_out_pad), jnp.float32),
        grid_spec=pltpu.PrefetchScalarGridSpec(
            num_scalar_prefetch=0,
            grid=(n_pad // tm,),
            in_specs=in_specs,
            out_specs=pl.BlockSpec((tm, d_out_pad), lambda i: (i, 0)),
        ),
        compiler_params=pltpu.CompilerParams(**compiler_kwargs),
    )(*flat_inputs)

    out = out[:N, :d_out]
    # TODO(synk): PyTorch's coords_org.requires_grad_(True) autograd hookup has
    # no kernel equivalent; model_in is returned as a plain array.
    return {"model_in": coords_org, "model_out": out}


# ---------------------------------------------------------------------------
# Parameter init matching the PyTorch module's __init__ (deterministic).
# ---------------------------------------------------------------------------
def init_lipschitz_mlp_params(key, n_in, n_out, hidden_layer_config):
    sizes = [n_in] + list(hidden_layer_config) + [n_out]
    params = []
    for ii in range(len(sizes) - 1):
        key, sub = jax.random.split(key)
        size_in, size_out = sizes[ii], sizes[ii + 1]
        W = jax.random.normal(sub, (size_out, size_in), jnp.float32) * jnp.sqrt(
            2.0 / size_in)
        b = jnp.zeros((size_out,), jnp.float32)
        c = jnp.max(jnp.sum(jnp.abs(W), axis=1))
        params.append((W, b, c))
    return params


# ---------------------------------------------------------------------------
# Pure-JAX reference matching the PyTorch semantics (sanity check).
# ---------------------------------------------------------------------------
def _reference_forward(params, x):
    def norm(W, c):
        absrowsum = jnp.sum(jnp.abs(W), axis=1)
        scale = jnp.minimum(1.0, jax.nn.softplus(c) / absrowsum)
        return W * scale[:, None]

    coords = x
    for (W, b, c) in params[:-1]:
        coords = jnp.tanh(coords @ norm(W, c).T + b)
    W, b, c = params[-1]
    return coords @ norm(W, c).T + b


if __name__ == "__main__":
    key = jax.random.PRNGKey(0)
    k_params, k_x = jax.random.split(key)

    # Small shapes consistent with the module (coords -> SDF style MLP),
    # padded to TPU-friendly feature widths.  batch / block_rows give a
    # 2-step grid that shards across v7x's two TensorCores.
    n_in, n_out = 16, 16
    hidden = [64, 64]
    batch = 2048
    block_rows = 1024

    params = init_lipschitz_mlp_params(k_params, n_in, n_out, hidden)
    x = jax.random.normal(k_x, (batch, n_in), jnp.float32)
    ref = _reference_forward(params, x)

    # Default fast path: bf16 MXU operands, f32 accumulate.
    out_bf16 = jax.block_until_ready(
        lipschitz_mlp_forward(params, x, block_rows=block_rows)["model_out"])
    assert out_bf16.shape == (batch, n_out)
    assert jnp.allclose(out_bf16, ref, atol=5e-2, rtol=5e-2), (
        "bf16 path mismatch, max abs err = "
        f"{float(jnp.max(jnp.abs(out_bf16 - ref)))}")

    # Ragged batch exercises the row-padding path (no tiny-tile fallback).
    x_rag = x[:1000]
    out_rag = jax.block_until_ready(
        lipschitz_mlp_forward(params, x_rag, block_rows=block_rows)["model_out"])
    assert out_rag.shape == (1000, n_out)
    assert jnp.allclose(out_rag, ref[:1000], atol=5e-2, rtol=5e-2)

    # Exact-precision path, checked tightly against the f32 reference.
    out_f32 = jax.block_until_ready(
        lipschitz_mlp_forward(params, x, block_rows=block_rows,
                              use_bf16=False)["model_out"])
    assert jnp.allclose(out_f32, ref, atol=1e-4, rtol=1e-4)

    print("KERNEL_OK")
</pallas_src>

<mosaic_0001>
module attributes {stable_mosaic.version = 11 : i64} {
  func.func @kernel(%arg0: i32, %arg1: memref<1024x16xbf16, #tpu.memory_space<vmem>>, %arg2: memref<16x64xbf16, #tpu.memory_space<vmem>>, %arg3: memref<1x64xf32, #tpu.memory_space<vmem>>, %arg4: memref<64x64xbf16, #tpu.memory_space<vmem>>, %arg5: memref<1x64xf32, #tpu.memory_space<vmem>>, %arg6: memref<64x128xbf16, #tpu.memory_space<vmem>>, %arg7: memref<1x128xf32, #tpu.memory_space<vmem>>, %arg8: memref<1024x128xf32, #tpu.memory_space<vmem>>) attributes {dimension_semantics = [#tpu.dimension_semantics<parallel>], iteration_bounds = array<i64: 2>, scalar_prefetch = 0 : i64, scratch_operands = 0 : i64, tpu.core_type = #tpu.core_type<tc>, window_params = [{transform_indices = @transform_0, window_bounds = array<i64: 1024, 16>}, {pipeline_mode = #tpu.pipeline_mode<synchronous>, transform_indices = @transform_1, window_bounds = array<i64: 16, 64>}, {pipeline_mode = #tpu.pipeline_mode<synchronous>, transform_indices = @transform_2, window_bounds = array<i64: 1, 64>}, {pipeline_mode = #tpu.pipeline_mode<synchronous>, transform_indices = @transform_3, window_bounds = array<i64: 64, 64>}, {pipeline_mode = #tpu.pipeline_mode<synchronous>, transform_indices = @transform_4, window_bounds = array<i64: 1, 64>}, {pipeline_mode = #tpu.pipeline_mode<synchronous>, transform_indices = @transform_5, window_bounds = array<i64: 64, 128>}, {pipeline_mode = #tpu.pipeline_mode<synchronous>, transform_indices = @transform_6, window_bounds = array<i64: 1, 128>}, {transform_indices = @transform_7, window_bounds = array<i64: 1024, 128>}]} {
    %c0 = arith.constant 0 : index
    %c0_0 = arith.constant 0 : index
    %0 = vector.load %arg1[%c0, %c0_0] : memref<1024x16xbf16, #tpu.memory_space<vmem>>, vector<1024x16xbf16>
    %c0_1 = arith.constant 0 : index
    %c0_2 = arith.constant 0 : index
    %1 = vector.load %arg2[%c0_1, %c0_2] : memref<16x64xbf16, #tpu.memory_space<vmem>>, vector<16x64xbf16>
    %c0_3 = arith.constant 0 : index
    %c0_4 = arith.constant 0 : index
    %2 = vector.load %arg3[%c0_3, %c0_4] : memref<1x64xf32, #tpu.memory_space<vmem>>, vector<1x64xf32>
    %cst = arith.constant dense<0.000000e+00> : vector<1024x64xf32>
    %3 = tpu.matmul %0, %1, %cst {dimension_numbers = #tpu.dot_dimension_numbers<[1], [0], [0], [1], [0, 0, 1, 1], [], []>} : vector<1024x16xbf16>, vector<16x64xbf16>, vector<1024x64xf32> -> vector<1024x64xf32>
    %4 = vector.broadcast %2 : vector<1x64xf32> to vector<1024x64xf32>
    %5 = arith.addf %3, %4 : vector<1024x64xf32>
    %6 = math.tanh %5 : vector<1024x64xf32>
    %7 = arith.truncf %6 : vector<1024x64xf32> to vector<1024x64xbf16>
    %c0_5 = arith.constant 0 : index
    %c0_6 = arith.constant 0 : index
    %8 = vector.load %arg4[%c0_5, %c0_6] : memref<64x64xbf16, #tpu.memory_space<vmem>>, vector<64x64xbf16>
    %c0_7 = arith.constant 0 : index
    %c0_8 = arith.constant 0 : index
    %9 = vector.load %arg5[%c0_7, %c0_8] : memref<1x64xf32, #tpu.memory_space<vmem>>, vector<1x64xf32>
    %cst_9 = arith.constant dense<0.000000e+00> : vector<1024x64xf32>
    %10 = tpu.matmul %7, %8, %cst_9 {dimension_numbers = #tpu.dot_dimension_numbers<[1], [0], [0], [1], [0, 0, 1, 1], [], []>} : vector<1024x64xbf16>, vector<64x64xbf16>, vector<1024x64xf32> -> vector<1024x64xf32>
    %11 = vector.broadcast %9 : vector<1x64xf32> to vector<1024x64xf32>
    %12 = arith.addf %10, %11 : vector<1024x64xf32>
    %13 = math.tanh %12 : vector<1024x64xf32>
    %14 = arith.truncf %13 : vector<1024x64xf32> to vector<1024x64xbf16>
    %c0_10 = arith.constant 0 : index
    %c0_11 = arith.constant 0 : index
    %15 = vector.load %arg6[%c0_10, %c0_11] : memref<64x128xbf16, #tpu.memory_space<vmem>>, vector<64x128xbf16>
    %c0_12 = arith.constant 0 : index
    %c0_13 = arith.constant 0 : index
    %16 = vector.load %arg7[%c0_12, %c0_13] : memref<1x128xf32, #tpu.memory_space<vmem>>, vector<1x128xf32>
    %cst_14 = arith.constant dense<0.000000e+00> : vector<1024x128xf32>
    %17 = tpu.matmul %14, %15, %cst_14 {dimension_numbers = #tpu.dot_dimension_numbers<[1], [0], [0], [1], [0, 0, 1, 1], [], []>} : vector<1024x64xbf16>, vector<64x128xbf16>, vector<1024x128xf32> -> vector<1024x128xf32>
    %18 = vector.broadcast %16 : vector<1x128xf32> to vector<1024x128xf32>
    %19 = arith.addf %17, %18 : vector<1024x128xf32>
    %c0_15 = arith.constant 0 : index
    %c0_16 = arith.constant 0 : index
    %20 = vector.load %arg8[%c0_15, %c0_16] : memref<1024x128xf32, #tpu.memory_space<vmem>>, vector<1024x128xf32>
    tpu.vector_store %arg8[%c0_15, %c0_16], %19 {strides = array<i32>} : memref<1024x128xf32, #tpu.memory_space<vmem>>, vector<1024x128xf32>,
    return
  }
  func.func @transform_0(%arg0: i32) -> (i32, i32) {
    %c0_i32 = arith.constant 0 : i32
    %c0_i32_0 = arith.constant 0 : i32
    return %arg0, %c0_i32 : i32, i32
  }
  func.func @transform_1(%arg0: i32) -> (i32, i32) {
    %c0_i32 = arith.constant 0 : i32
    %c0_i32_0 = arith.constant 0 : i32
    %c0_i32_1 = arith.constant 0 : i32
    return %c0_i32, %c0_i32_0 : i32, i32
  }
  func.func @transform_2(%arg0: i32) -> (i32, i32) {
    %c0_i32 = arith.constant 0 : i32
    %c0_i32_0 = arith.constant 0 : i32
    %c0_i32_1 = arith.constant 0 : i32
    return %c0_i32, %c0_i32_0 : i32, i32
  }
  func.func @transform_3(%arg0: i32) -> (i32, i32) {
    %c0_i32 = arith.constant 0 : i32
    %c0_i32_0 = arith.constant 0 : i32
    %c0_i32_1 = arith.constant 0 : i32
    return %c0_i32, %c0_i32_0 : i32, i32
  }
  func.func @transform_4(%arg0: i32) -> (i32, i32) {
    %c0_i32 = arith.constant 0 : i32
    %c0_i32_0 = arith.constant 0 : i32
    %c0_i32_1 = arith.constant 0 : i32
    return %c0_i32, %c0_i32_0 : i32, i32
  }
  func.func @transform_5(%arg0: i32) -> (i32, i32) {
    %c0_i32 = arith.constant 0 : i32
    %c0_i32_0 = arith.constant 0 : i32
    %c0_i32_1 = arith.constant 0 : i32
    return %c0_i32, %c0_i32_0 : i32, i32
  }
  func.func @transform_6(%arg0: i32) -> (i32, i32) {
    %c0_i32 = arith.constant 0 : i32
    %c0_i32_0 = arith.constant 0 : i32
    %c0_i32_1 = arith.constant 0 : i32
    return %c0_i32, %c0_i32_0 : i32, i32
  }
  func.func @transform_7(%arg0: i32) -> (i32, i32) {
    %c0_i32 = arith.constant 0 : i32
    %c0_i32_0 = arith.constant 0 : i32
    return %arg0, %c0_i32 : i32, i32
  }
}

</mosaic_0001>

<bundles_post_ra>
// kernel: tpu_custom_call.1
= control target key start
LH: loop header
LB: loop body
LE: loop exit
PB: predicated region body
PF: predicated region fallthrough
CT: control target
= control target key end

     0   :  { %12 = vsyncpa [#allocation3], 0  ;;  %s6463_s0 = inlined_call_operand.vmem [shape: bf16[2048,16], index: 0, kind: input, shape index: {}]   ;;  %s6464_s1 = inlined_call_operand.vmem [shape: bf16[16,64], index: 1, kind: input, shape index: {}]   ;;  %s6465_s2 = inlined_call_operand.vmem [shape: f32[1,64], index: 2, kind: input, shape index: {}]   ;;  %s6466_s3 = inlined_call_operand.vmem [shape: bf16[64,64], index: 3, kind: input, shape index: {}]   ;;  %s6467_s4 = inlined_call_operand.vmem [shape: f32[1,64], index: 4, kind: input, shape index: {}]   ;;  %s6468_s5 = inlined_call_operand.vmem [shape: bf16[64,128], index: 5, kind: input, shape index: {}]   ;;  %s6469_s6 = inlined_call_operand.vmem [shape: f32[1,128], index: 6, kind: input, shape index: {}]   ;;  %s6470_s7 = inlined_call_operand.hbm [shape: f32[2048,128], index: 7, kind: output, shape index: {}]  }
   0x1   :  { %14 = vsyncpa [#allocation3 + $0x1], 0  ;;  %s5244_s24 = smov 0   ;;  %s5246_s25 = smov 0  }
   0x2   :  { %s5248_s26 = smov 0   ;;  %s5250_s27 = smov 0  }
   0x3 LB: > { %s5265_s28 = sadd.s32 4294967295, %s5199_s27   ;;  %s3623_s29 = sadd.s32 4294967294, %s5199_s27   ;;  %s5199_s27 = sphi %s5250_s27, %s6507_s27   ;;  %s5195_s26 = sphi %s5248_s26, %s6506_s26   ;;  %s5191_s25 = sphi %s5246_s25, %s6505_s25   ;;  %s5187_s24 = sphi %s5244_s24, %s6504_s24  }
   0x4   : > { %s5269_s30 = sadd.s32 1, %s5199_s27   ;;  %s179_s8 = sadd.s32 1, %s5195_s26 }
   0x5   : > { %s176_s9 = ssub.s32 %s5199_s27, %s5269_s30  ;;  %p189_p0 = scmp.ne.s32.totalorder %s5195_s26, %s5191_s25 }
   0x6   : > { %p177_p1 = scmp.eq.s32.totalorder %s176_s9, 0  ;;  %p190_p2 = scmp.eq.s32.totalorder %s5265_s28, 1 }
   0x7   : > { %p195_p3 = scmp.ne.s32.totalorder %s5191_s25, %s5187_s24  ;;  %p196_p4 = scmp.eq.s32.totalorder %s3623_s29, 1 }
   0x8   : > { %s5280_s10 = scalar_select %p177_p1, %s5195_s26, %s179_s8  }
   0x9   : > { %p5282_p5 = por %p190_p2, %p189_p0  ;;  %p5286_p6 = por %p196_p4, %p195_p3 }
   0xa   : > { %p3626_p7 = scmp.ge.s32.totalorder %s5199_s27, 1  ;;  %p241_p8 = scmp.lt.s32.totalorder %s5199_s27, 3 }
   0xc   : > { %p242_p9 = pnand %p3626_p7, %p241_p8 }
   0xe   : > { %245 = sbr.rel (%p242_p9) target bundleno = 971 (0x3cb), region = 48 }
  0x15   : > { %v4550_v0 = vld [vmem:[%s6464_s1] sm:$0xff]   ;;  %s3628_s15 = sshll.u32 %s5265_s28, 7  ;;  %vm744_vm0 = vcmask 130048   ;;  %v4594_v11 = vld [vmem:[%s6466_s3 + $0x8] sm:$0xff]   ;;  %v4603_v14 = vld [vmem:[%s6466_s3 + $0x10] sm:$0xff]   ;;  %vm1713_vm1 = vcmask 523264  }
  0x16   : > { %p274_p10 = scmp.lt.s32.totalorder %s3628_s15, 255  ;;  %4105 = vmatprep.subr.bf16.mxu0 %v4550_v0  ;;  %4507 = vmatprep.subr.bf16.mxu1 %v4550_v0  ;;  %v4579_v1 = vld [vmem:[%s6466_s3] sm:$0xff]   ;;  %v4612_v20 = vld [vmem:[%s6466_s3 + $0x18] sm:$0xff]   ;;  %s270_s16 = sand.u32 1, %s5191_s25  }
  0x17   : > { %4106 = vmatpush3.bf16.msra.mxu0 %v4550_v0  ;;  %4508 = vmatpush3.bf16.msra.mxu1 %v4550_v0  ;;  %s3627_s17 = sshll.u32 %s270_s16, 10  ;;  %s5201_s13 = smov [#allocation2]  }
  0x18   : > { %s6509_s15 = smov (!%p274_p10, %s3628_s15), 255  ;;  %4235 = vmatprep.subr.bf16.mxu1 %v4579_v1  ;;  %s6134_s20 = scalar_lea.vmem [#allocation2], %s3627_s17 }
  0x19   : > { %s3629_s18 = sshll.u32 %s6509_s15, 2  ;;  %s3561_s22 = sshll.u32 %s6134_s20, 4  ;;  %s6414_s22 = int_to_ptr.vmem [resolvable:$true] %s3561_s22 }
  0x1a   : > { %s5302_s21 = scalar_lea.vmem %s6463_s0, %s3629_s18  ;;  %s5137_s9 = scalar_lea.vmem %s6414_s22, 16384 }
  0x1b   : > { %v4551_v2 = vld [vmem:[%s5302_s21] sm:$0xff]   ;;  %v4552_v3 = vld [vmem:[%s5302_s21 + $0x8] sm:$0xff]   ;;  %v4553_v4 = vld [vmem:[%s5302_s21 + $0x10] sm:$0xff]   ;;  %p5138_p11 = scmp.ne.s32.totalorder %s6414_s22, %s5137_s9  ;;  %s5141_s14 = sshll.u32 %s5201_s13, 4  ;;  %s5142_s14 = int_to_ptr.vmem [resolvable:$false] %s5141_s14 }
  0x1c   : > { %4107 = vmatprep.mubr.msk.bf16.mxu0 %vm744_vm0, %v4551_v2  ;;  %v4554_v5 = vld [vmem:[%s5302_s21 + $0x18] sm:$0xff]   ;;  %v4555_v6 = vld [vmem:[%s5302_s21 + $0x20] sm:$0xff]   ;;  %v4556_v7 = vld [vmem:[%s5302_s21 + $0x28] sm:$0xff]   ;;  %s5143_s15 = scalar_lea.vmem %s5142_s14, 32768  ;;  %p5144_p0 = scmp.lt.s32.totalorder %s6414_s22, %s5142_s14 }
  0x1d   : > { %4108 = vmatmul.mubr.msk.bf16.vlgmr.msra.gmra.mrb[0].mxu0 %vm744_vm0, %v4552_v3  ;;  %v4557_v8 = vld [vmem:[%s5302_s21 + $0x30] sm:$0xff]   ;;  %v4558_v9 = vld [vmem:[%s5302_s21 + $0x38] sm:$0xff]   ;;  %v4559_v10 = vld [vmem:[%s5302_s21 + $0x40] sm:$0xff]   ;;  %p5139_p12 = pnand %p5138_p11, %p5282_p5  ;;  %p5145_p1 = scmp.lt.s32.totalorder %s5143_s15, %s5137_s9 }
  0x1e   : > { %4111 = vmatprep.mubr.msk.bf16.mxu0 %vm744_vm0, %v4553_v4  ;;  %v4577_v12 = vld [vmem:[%s5302_s21 + $0x100] sm:$0xff]   ;;  %v4578_v13 = vld [vmem:[%s5302_s21 + $0x108] sm:$0xff]   ;;  %v4582_v15 = vld [vmem:[%s5302_s21 + $0x110] sm:$0xff]  }
  0x1f   : > { %4171 = vmatprep.mubr.msk.bf16.mxu1 %vm744_vm0, %v4577_v12  ;;  %v4560_v16 = vld [vmem:[%s5302_s21 + $0x48] sm:$0xff]   ;;  %v4561_v17 = vld [vmem:[%s5302_s21 + $0x50] sm:$0xff]   ;;  %v4583_v18 = vld [vmem:[%s5302_s21 + $0x118] sm:$0xff]   ;;  %p5140_p13 = pneg %p5139_p12  ;;  %p5146_p2 = por %p5145_p1, %p5144_p0 }
  0x20   : > { %4172 = vmatmul.mubr.msk.bf16.vlgmr.msra.gmra.mrb[0].mxu1 %vm744_vm0, %v4578_v13  ;;  %v4586_v19 = vld [vmem:[%s5302_s21 + $0x120] sm:$0xff]   ;;  %v4562_v21 = vld [vmem:[%s5302_s21 + $0x58] sm:$0xff]   ;;  %v4587_v23 = vld [vmem:[%s5302_s21 + $0x128] sm:$0xff]  }
  0x21   : > { %4236 = vmatpush3.bf16.msra.mxu1 %v4579_v1  ;;  %4175 = vmatprep.mubr.msk.bf16.mxu1 %vm744_vm0, %v4582_v15  ;;  %v4563_v22 = vld [vmem:[%s5302_s21 + $0x60] sm:$0xff]   ;;  %v4590_v24 = vld [vmem:[%s5302_s21 + $0x130] sm:$0xff]   ;;  %v4564_v25 = vld [vmem:[%s5302_s21 + $0x68] sm:$0xff]   ;;  %p5147_p3 = pnand %p5146_p2, %p5140_p13 }
  0x22   : > { %4237 = vmatprep.subr.bf16.mxu1 %v4594_v11  ;;  %v4565_v26 = vld [vmem:[%s5302_s21 + $0x70] sm:$0xff]   ;;  %v4591_v27 = vld [vmem:[%s5302_s21 + $0x138] sm:$0xff]   ;;  %v4592_v28 = vld [vmem:[%s5302_s21 + $0x140] sm:$0xff]  }
  0x23   : > { %v4566_v29 = vld [vmem:[%s5302_s21 + $0x78] sm:$0xff]   ;;  %v4567_v30 = vld [vmem:[%s5302_s21 + $0x80] sm:$0xff]   ;;  %v4593_v31 = vld [vmem:[%s5302_s21 + $0x148] sm:$0xff]  }
  0x24   : > { %v4595_v32 = vld [vmem:[%s5302_s21 + $0x150] sm:$0xff]   ;;  %v4568_v33 = vld [vmem:[%s5302_s21 + $0x88] sm:$0xff]   ;;  %v4596_v35 = vld [vmem:[%s5302_s21 + $0x158] sm:$0xff]  }
  0x25   : > { %4112 = vmatmul.mubr.msk.bf16.gmra.mrb[4].mxu0 %vm744_vm0, %v4554_v5  ;;  %4238 = vmatpush3.bf16.msra.mxu1 %v4594_v11  ;;  %v4569_v34 = vld [vmem:[%s5302_s21 + $0x90] sm:$0xff]   ;;  %v4597_v36 = vld [vmem:[%s5302_s21 + $0x160] sm:$0xff]   ;;  %v4570_v37 = vld [vmem:[%s5302_s21 + $0x98] sm:$0xff]  }
  0x26   : > { %4115 = vmatprep.mubr.msk.bf16.mxu0 %vm744_vm0, %v4555_v6  ;;  %4239 = vmatprep.subr.bf16.mxu1 %v4603_v14  ;;  %v4571_v38 = vld [vmem:[%s5302_s21 + $0xa0] sm:$0xff]   ;;  %v4598_v39 = vld [vmem:[%s5302_s21 + $0x168] sm:$0xff]   ;;  %v4599_v40 = vld [vmem:[%s5302_s21 + $0x170] sm:$0xff]  }
  0x27   : > { %v4572_v41 = vld [vmem:[%s5302_s21 + $0xa8] sm:$0xff]   ;;  %v4573_v42 = vld [vmem:[%s5302_s21 + $0xb0] sm:$0xff]   ;;  %v4600_v43 = vld [vmem:[%s5302_s21 + $0x178] sm:$0xff]  }
  0x28   : > { %4176 = vmatmul.mubr.msk.bf16.gmra.mrb[4].mxu1 %vm744_vm0, %v4583_v18  ;;  %v4601_v44 = vld [vmem:[%s5302_s21 + $0x180] sm:$0xff]   ;;  %v4574_v45 = vld [vmem:[%s5302_s21 + $0xb8] sm:$0xff]   ;;  %v4602_v47 = vld [vmem:[%s5302_s21 + $0x188] sm:$0xff]  }
  0x29   : > { %4179 = vmatprep.mubr.msk.bf16.mxu1 %vm744_vm0, %v4586_v19  ;;  %4240 = vmatpush3.bf16.msra.mxu1 %v4603_v14  ;;  %v4575_v46 = vld [vmem:[%s5302_s21 + $0xc0] sm:$0xff]   ;;  %v4604_v48 = vld [vmem:[%s5302_s21 + $0x190] sm:$0xff]   ;;  %v4576_v49 = vld [vmem:[%s5302_s21 + $0xc8] sm:$0xff]  }
  0x2a   : > { %4241 = vmatprep.subr.bf16.mxu1 %v4612_v20  ;;  %v4580_v50 = vld [vmem:[%s5302_s21 + $0xd0] sm:$0xff]   ;;  %v4605_v51 = vld [vmem:[%s5302_s21 + $0x198] sm:$0xff]   ;;  %v4606_v52 = vld [vmem:[%s5302_s21 + $0x1a0] sm:$0xff]  }
  0x2b   : > { %v4581_v53 = vld [vmem:[%s5302_s21 + $0xd8] sm:$0xff]   ;;  %v4584_v54 = vld [vmem:[%s5302_s21 + $0xe0] sm:$0xff]   ;;  %v4607_v55 = vld [vmem:[%s5302_s21 + $0x1a8] sm:$0xff]  }
  0x2c   : > { %v4608_v56 = vld [vmem:[%s5302_s21 + $0x1b0] sm:$0xff]   ;;  %v4585_v57 = vld [vmem:[%s5302_s21 + $0xe8] sm:$0xff]   ;;  %v4609_v59 = vld [vmem:[%s5302_s21 + $0x1b8] sm:$0xff]  }
  0x2d   : > { %4116 = vmatmul.mubr.msk.bf16.gmra.mrb[8].mxu0 %vm744_vm0, %v4556_v7  ;;  %4242 = vmatpush3.bf16.msra.mxu1 %v4612_v20  ;;  %v4588_v58 = vld [vmem:[%s5302_s21 + $0xf0] sm:$0xff]   ;;  %v4610_v60 = vld [vmem:[%s5302_s21 + $0x1c0] sm:$0xff]   ;;  %v4589_v61 = vld [vmem:[%s5302_s21 + $0xf8] sm:$0xff]  }
  0x2e   : > { %4119 = vmatprep.mubr.msk.bf16.mxu0 %vm744_vm0, %v4557_v8  ;;  %v4611_v62 = vld [vmem:[%s5302_s21 + $0x1c8] sm:$0xff]   ;;  %v4613_v63 = vld [vmem:[%s5302_s21 + $0x1d0] sm:$0xff]   ;;  %v4614_v0 = vld [vmem:[%s5302_s21 + $0x1d8] sm:$0xff]  }
  0x2f   : > { %v4615_v1 = vld [vmem:[%s5302_s21 + $0x1e0] sm:$0xff]   ;;  %v4616_v2 = vld [vmem:[%s5302_s21 + $0x1e8] sm:$0xff]   ;;  %v4617_v3 = vld [vmem:[%s5302_s21 + $0x1f0] sm:$0xff]  }
  0x30   : > { %4180 = vmatmul.mubr.msk.bf16.gmra.mrb[8].mxu1 %vm744_vm0, %v4587_v23  ;;  %v4618_v4 = vld [vmem:[%s5302_s21 + $0x1f8] sm:$0xff]   ;;  %v4619_v5 = vld [vmem:[%s6468_s5] sm:$0xff]   ;;  %s3903_s21 = sshll.u32 %s5265_s28, 14  ;;  %s6422_s28 = scalar_lea.sflag [#allocation3], %s270_s16 }
  0x31   : > { %4183 = vmatprep.mubr.msk.bf16.mxu1 %vm744_vm0, %v4590_v24  ;;  %v5447_v6 = vld [vmem:[%s6465_s2] ss:$0 sm:$0xff]  ;;  %4371 = vmatprep.subr.bf16.mxu0 %v4619_v5  ;;  %s6412_s8 = scalar_lea.hbm %s6470_s7, %s3903_s21 }
  0x32   : > { %4372 = vmatpush3.bf16.msra.mxu0 %v4619_v5 }
  0x35   : > { %4120 = vmatmul.mubr.msk.bf16.gmra.mrb[12].mxu0 %vm744_vm0, %v4558_v9 }
  0x36   : > { %4123 = vmatprep.mubr.msk.bf16.mxu0 %vm744_vm0, %v4559_v10 }
  0x38   : > { %4184 = vmatmul.mubr.msk.bf16.gmra.mrb[12].mxu1 %vm744_vm0, %v4591_v27 }
  0x39   : > { %4187 = vmatprep.mubr.msk.bf16.mxu1 %vm744_vm0, %v4592_v28 }
  0x3d   : > { %4124 = vmatmul.mubr.msk.bf16.gmra.mrb[16].mxu0 %vm744_vm0, %v4560_v16 }
  0x3e   : > { %4127 = vmatprep.mubr.msk.bf16.mxu0 %vm744_vm0, %v4561_v17 }
  0x40   : > { %4188 = vmatmul.mubr.msk.bf16.gmra.mrb[16].mxu1 %vm744_vm0, %v4593_v31 }
  0x41   : > { %4191 = vmatprep.mubr.msk.bf16.mxu1 %vm744_vm0, %v4595_v32 }
  0x45   : > { %4128 = vmatmul.mubr.msk.bf16.gmra.mrb[20].mxu0 %vm744_vm0, %v4562_v21 }
  0x46   : > { %4131 = vmatprep.mubr.msk.bf16.mxu0 %vm744_vm0, %v4563_v22 }
  0x48   : > { %4192 = vmatmul.mubr.msk.bf16.gmra.mrb[20].mxu1 %vm744_vm0, %v4596_v35 }
  0x49   : > { %4195 = vmatprep.mubr.msk.bf16.mxu1 %vm744_vm0, %v4597_v36 }
  0x4d   : > { %4132 = vmatmul.mubr.msk.bf16.gmra.mrb[24].mxu0 %vm744_vm0, %v4564_v25 }
  0x4e   : > { %4135 = vmatprep.mubr.msk.bf16.mxu0 %vm744_vm0, %v4565_v26 }
  0x50   : > { %4196 = vmatmul.mubr.msk.bf16.gmra.mrb[24].mxu1 %vm744_vm0, %v4598_v39 }
  0x51   : > { %4199 = vmatprep.mubr.msk.bf16.mxu1 %vm744_vm0, %v4599_v40 }
  0x55   : > { %4136 = vmatmul.mubr.msk.bf16.gmra.mrb[28].mxu0 %vm744_vm0, %v4566_v29 }
  0x56   : > { %4139 = vmatprep.mubr.msk.bf16.mxu0 %vm744_vm0, %v4567_v30 }
  0x58   : > { %4200 = vmatmul.mubr.msk.bf16.gmra.mrb[28].mxu1 %vm744_vm0, %v4600_v43 }
  0x59   : > { %4203 = vmatprep.mubr.msk.bf16.mxu1 %vm744_vm0, %v4601_v44 }
  0x5d   : > { %4140 = vmatmul.mubr.msk.bf16.gmra.mrb[32].mxu0 %vm744_vm0, %v4568_v33 }
  0x5e   : > { %4143 = vmatprep.mubr.msk.bf16.mxu0 %vm744_vm0, %v4569_v34 }
  0x60   : > { %4204 = vmatmul.mubr.msk.bf16.gmra.mrb[32].mxu1 %vm744_vm0, %v4602_v47 }
  0x61   : > { %4207 = vmatprep.mubr.msk.bf16.mxu1 %vm744_vm0, %v4604_v48 }
  0x65   : > { %4144 = vmatmul.mubr.msk.bf16.gmra.mrb[36].mxu0 %vm744_vm0, %v4570_v37 }
  0x66   : > { %4147 = vmatprep.mubr.msk.bf16.mxu0 %vm744_vm0, %v4571_v38  ;;  %v4620_v38 = vld [vmem:[%s6468_s5 + $0x8] sm:$0xff]  }
  0x67   : > { %4373 = vmatprep.subr.bf16.mxu0 %v4620_v38 }
  0x68   : > { %4208 = vmatmul.mubr.msk.bf16.gmra.mrb[36].mxu1 %vm744_vm0, %v4605_v51  ;;  %4374 = vmatpush3.bf16.msra.mxu0 %v4620_v38 }
  0x69   : > { %4211 = vmatprep.mubr.msk.bf16.mxu1 %vm744_vm0, %v4606_v52 }
  0x6d   : > { %4148 = vmatmul.mubr.msk.bf16.gmra.mrb[40].mxu0 %vm744_vm0, %v4572_v41 }
  0x6e   : > { %4151 = vmatprep.mubr.msk.bf16.mxu0 %vm744_vm0, %v4573_v42 }
  0x70   : > { %4212 = vmatmul.mubr.msk.bf16.gmra.mrb[40].mxu1 %vm744_vm0, %v4607_v55 }
  0x71   : > { %4215 = vmatprep.mubr.msk.bf16.mxu1 %vm744_vm0, %v4608_v56 }
  0x75   : > { %4152 = vmatmul.mubr.msk.bf16.gmra.mrb[44].mxu0 %vm744_vm0, %v4574_v45 }
  0x76   : > { %4155 = vmatprep.mubr.msk.bf16.mxu0 %vm744_vm0, %v4575_v46 }
  0x78   : > { %4216 = vmatmul.mubr.msk.bf16.gmra.mrb[44].mxu1 %vm744_vm0, %v4609_v59 }
  0x79   : > { %4219 = vmatprep.mubr.msk.bf16.mxu1 %vm744_vm0, %v4610_v60 }
  0x7d   : > { %4156 = vmatmul.mubr.msk.bf16.gmra.mrb[48].mxu0 %vm744_vm0, %v4576_v49 }
  0x7e   : > { %4159 = vmatprep.mubr.msk.bf16.mxu0 %vm744_vm0, %v4580_v50 }
  0x80   : > { %4220 = vmatmul.mubr.msk.bf16.gmra.mrb[48].mxu1 %vm744_vm0, %v4611_v62 }
  0x81   : > { %4223 = vmatprep.mubr.msk.bf16.mxu1 %vm744_vm0, %v4613_v63 }
  0x85   : > { %4160 = vmatmul.mubr.msk.bf16.gmra.mrb[52].mxu0 %vm744_vm0, %v4581_v53 }
  0x86   : > { %4163 = vmatprep.mubr.msk.bf16.mxu0 %vm744_vm0, %v4584_v54 }
  0x88   : > { %4224 = vmatmul.mubr.msk.bf16.gmra.mrb[52].mxu1 %vm744_vm0, %v4614_v0 }
  0x89   : > { %4227 = vmatprep.mubr.msk.bf16.mxu1 %vm744_vm0, %v4615_v1 }
  0x8d   : > { %4164 = vmatmul.mubr.msk.bf16.gmra.mrb[56].mxu0 %vm744_vm0, %v4585_v57 }
  0x8e   : > { %4167 = vmatprep.mubr.msk.bf16.mxu0 %vm744_vm0, %v4588_v58 }
  0x90   : > { %4228 = vmatmul.mubr.msk.bf16.gmra.mrb[56].mxu1 %vm744_vm0, %v4616_v2 }
  0x91   : > { %4231 = vmatprep.mubr.msk.bf16.mxu1 %vm744_vm0, %v4617_v3 }
  0x95   : > { %4168 = vmatmul.mubr.msk.bf16.gmra.mrb[60].mxu0 %vm744_vm0, %v4589_v61 }
  0x98   : > { %4232 = vmatmul.mubr.msk.bf16.gmra.mrb[60].mxu1 %vm744_vm0, %v4618_v4 }
  0xf0   : > { %v4109_v7 = vpop.f32.mrb[0].mxu0 }
  0xf1   : > { %v980_v8 = vadd.f32 %v4109_v7, %v5447_v6  ;;  %v971_v9 = vpop.f32.mrb[1].mxu0 }
  0xf2   : > { %v972_v10 = vadd.f32 %v5447_v6, %v971_v9  ;;  %v4110_v11 = vpop.f32.mrb[2].mxu0 }
  0xf3   : > { %4623 = vtanh.f32 %v980_v8  ;;  %v983_v12 = vadd.f32 %v4110_v11, %v5447_v6  ;;  %v974_v13 = vpop.f32.mrb[3].mxu0  ;;  %v4173_v49 = vpop.f32.mrb[0].mxu1 }
  0xf4   : > { %4625 = vtanh.f32 %v972_v10  ;;  %v975_v14 = vadd.f32 %v5447_v6, %v974_v13  ;;  %v1236_v52 = vadd.f32 %v4173_v49, %v5447_v6  ;;  %v1227_v53 = vpop.f32.mrb[1].mxu1 }
  0xf5   : > { %4627 = vtanh.f32 %v983_v12  ;;  %v1228_v55 = vadd.f32 %v5447_v6, %v1227_v53  ;;  %v4174_v56 = vpop.f32.mrb[2].mxu1 }
  0xf6   : > { %4629 = vtanh.f32 %v975_v14  ;;  %v1239_v58 = vadd.f32 %v4174_v56, %v5447_v6  ;;  %v1230_v59 = vpop.f32.mrb[3].mxu1 }
  0xf7   : > { %v1231_v61 = vadd.f32 %v5447_v6, %v1230_v59 }
  0xf8   : > { %v4113_v15 = vpop.f32.mrb[4].mxu0 }
  0xf9   : > { %v996_v16 = vadd.f32 %v4113_v15, %v5447_v6  ;;  %v987_v17 = vpop.f32.mrb[5].mxu0 }
  0xfa   : > { %v988_v18 = vadd.f32 %v5447_v6, %v987_v17  ;;  %v4114_v19 = vpop.f32.mrb[6].mxu0 }
  0xfb   : > { %4631 = vtanh.f32 %v996_v16  ;;  %v999_v20 = vadd.f32 %v4114_v19, %v5447_v6  ;;  %v990_v21 = vpop.f32.mrb[7].mxu0  ;;  %v4177_v8 = vpop.f32.mrb[4].mxu1 }
  0xfc   : > { %4633 = vtanh.f32 %v988_v18  ;;  %v991_v22 = vadd.f32 %v5447_v6, %v990_v21  ;;  %v1252_v11 = vadd.f32 %v4177_v8, %v5447_v6  ;;  %v1243_v12 = vpop.f32.mrb[5].mxu1 }
  0xfd   : > { %v4624_v23 = vpop.eup %4623  ;;  %4635 = vtanh.f32 %v999_v20  ;;  %v1244_v14 = vadd.f32 %v5447_v6, %v1243_v12  ;;  %v4178_v15 = vpop.f32.mrb[6].mxu1  ;;  %v4621_v12 = vld [vmem:[%s6468_s5 + $0x10] sm:$0xff]  }
  0xfe   : > { %v4626_v24 = vpop.eup %4625  ;;  %4637 = vtanh.f32 %v991_v22  ;;  %v1255_v17 = vadd.f32 %v4178_v15, %v5447_v6  ;;  %v1246_v18 = vpop.f32.mrb[7].mxu1  ;;  %4375 = vmatprep.subr.bf16.mxu0 %v4621_v12 }
  0xff   : > { %v4628_v25 = vpop.eup %4627  ;;  %v1247_v20 = vadd.f32 %v5447_v6, %v1246_v18  ;;  %4376 = vmatpush3.bf16.msra.mxu0 %v4621_v12 }
 0x100   : > { %v4630_v26 = vpop.eup %4629  ;;  %v1611_v27 = vpack.c.bf16 %v4628_v25, %v4624_v23  ;;  %v4117_v28 = vpop.f32.mrb[8].mxu0 }
 0x101   : > { %v1012_v29 = vadd.f32 %v4117_v28, %v5447_v6  ;;  %v1003_v30 = vpop.f32.mrb[9].mxu0  ;;  %v1610_v31 = vpack.c.bf16 %v4630_v26, %v4626_v24 }
 0x102   : > { %v1004_v32 = vadd.f32 %v5447_v6, %v1003_v30  ;;  %v4118_v33 = vpop.f32.mrb[10].mxu0 }
 0x103   : > { %4639 = vtanh.f32 %v1012_v29  ;;  %v1015_v34 = vadd.f32 %v4118_v33, %v5447_v6  ;;  %v1006_v35 = vpop.f32.mrb[11].mxu0  ;;  %4243 = vmatprep.mubr.msk.bf16.mxu1 %vm1713_vm1, %v1610_v31 }
 0x104   : > { %4641 = vtanh.f32 %v1004_v32  ;;  %v1007_v36 = vadd.f32 %v5447_v6, %v1006_v35  ;;  %4244 = vmatmul.mubr.msk.bf16.vlgmr.msra.gmra.mrb[64].mxu1 %vm1713_vm1, %v1611_v27  ;;  %v4181_v32 = vpop.f32.mrb[8].mxu1 }
 0x105   : > { %v4632_v37 = vpop.eup %4631  ;;  %4643 = vtanh.f32 %v1015_v34 }
 0x106   : > { %v4634_v39 = vpop.eup %4633  ;;  %4645 = vtanh.f32 %v1007_v36  ;;  %v1268_v36 = vadd.f32 %v4181_v32, %v5447_v6 }
 0x107   : > { %v4636_v40 = vpop.eup %4635 }
 0x108   : > { %v4638_v41 = vpop.eup %4637  ;;  %v4121_v42 = vpop.f32.mrb[12].mxu0  ;;  %v1613_v43 = vpack.c.bf16 %v4636_v40, %v4632_v37 }
 0x109   : > { %v1028_v44 = vadd.f32 %v4121_v42, %v5447_v6  ;;  %v1019_v45 = vpop.f32.mrb[13].mxu0  ;;  %v1612_v46 = vpack.c.bf16 %v4638_v41, %v4634_v39  ;;  %v1259_v37 = vpop.f32.mrb[9].mxu1 }
 0x10a   : > { %v1020_v47 = vadd.f32 %v5447_v6, %v1019_v45  ;;  %v4122_v48 = vpop.f32.mrb[14].mxu0  ;;  %v1260_v40 = vadd.f32 %v5447_v6, %v1259_v37  ;;  %v4182_v41 = vpop.f32.mrb[10].mxu1 }
 0x10b   : > { %4647 = vtanh.f32 %v1028_v44  ;;  %v1031_v50 = vadd.f32 %v4122_v48, %v5447_v6  ;;  %v1022_v51 = vpop.f32.mrb[15].mxu0  ;;  %4247 = vmatprep.mubr.msk.bf16.mxu1 %vm1713_vm1, %v1612_v46  ;;  %v1271_v44 = vadd.f32 %v4182_v41, %v5447_v6  ;;  %v1262_v45 = vpop.f32.mrb[11].mxu1 }
 0x10c   : > { %4649 = vtanh.f32 %v1020_v47  ;;  %v1023_v54 = vadd.f32 %v5447_v6, %v1022_v51  ;;  %4248 = vmatmul.mubr.msk.bf16.gmra.mrb[68].mxu1 %vm1713_vm1, %v1613_v43  ;;  %v1263_v48 = vadd.f32 %v5447_v6, %v1262_v45 }
 0x10d   : > { %v4640_v57 = vpop.eup %4639  ;;  %4651 = vtanh.f32 %v1031_v50 }
 0x10e   : > { %v4642_v60 = vpop.eup %4641  ;;  %4653 = vtanh.f32 %v1023_v54 }
 0x10f   : > { %v4644_v62 = vpop.eup %4643  ;;  %4655 = vtanh.f32 %v1236_v52 }
 0x110   : > { %v4646_v63 = vpop.eup %4645  ;;  %v4125_v0 = vpop.f32.mrb[16].mxu0  ;;  %v1615_v1 = vpack.c.bf16 %v4644_v62, %v4640_v57  ;;  %4657 = vtanh.f32 %v1228_v55 }
 0x111   : > { %v1044_v2 = vadd.f32 %v4125_v0, %v5447_v6  ;;  %v1035_v3 = vpop.f32.mrb[17].mxu0  ;;  %v1614_v4 = vpack.c.bf16 %v4646_v63, %v4642_v60  ;;  %4659 = vtanh.f32 %v1239_v58  ;;  %v4185_v60 = vpop.f32.mrb[12].mxu1 }
 0x112   : > { %v1036_v5 = vadd.f32 %v5447_v6, %v1035_v3  ;;  %v4126_v7 = vpop.f32.mrb[18].mxu0  ;;  %4661 = vtanh.f32 %v1231_v61  ;;  %v1284_v0 = vadd.f32 %v4185_v60, %v5447_v6 }
 0x113   : > { %4663 = vtanh.f32 %v1044_v2  ;;  %v1047_v9 = vadd.f32 %v4126_v7, %v5447_v6  ;;  %v1038_v10 = vpop.f32.mrb[19].mxu0  ;;  %4251 = vmatprep.mubr.msk.bf16.mxu1 %vm1713_vm1, %v1614_v4 }
 0x114   : > { %4665 = vtanh.f32 %v1036_v5  ;;  %v1039_v13 = vadd.f32 %v5447_v6, %v1038_v10  ;;  %4252 = vmatmul.mubr.msk.bf16.gmra.mrb[72].mxu1 %vm1713_vm1, %v1615_v1  ;;  %v1275_v1 = vpop.f32.mrb[13].mxu1 }
 0x115   : > { %v4648_v16 = vpop.eup %4647  ;;  %4667 = vtanh.f32 %v1047_v9  ;;  %v1276_v4 = vadd.f32 %v5447_v6, %v1275_v1  ;;  %v4186_v5 = vpop.f32.mrb[14].mxu1 }
 0x116   : > { %v4650_v19 = vpop.eup %4649  ;;  %4669 = vtanh.f32 %v1039_v13  ;;  %v1287_v9 = vadd.f32 %v4186_v5, %v5447_v6  ;;  %v1278_v10 = vpop.f32.mrb[15].mxu1 }
 0x117   : > { %v4652_v21 = vpop.eup %4651  ;;  %4671 = vtanh.f32 %v1252_v11 }
 0x118   : > { %v4654_v22 = vpop.eup %4653  ;;  %v4129_v23 = vpop.f32.mrb[20].mxu0  ;;  %v1617_v24 = vpack.c.bf16 %v4652_v21, %v4648_v16  ;;  %4673 = vtanh.f32 %v1244_v14  ;;  %v1279_v14 = vadd.f32 %v5447_v6, %v1278_v10 }
 0x119   : > { %v5486_v25 = vpop.eup %4655  ;;  %v1060_v26 = vadd.f32 %v4129_v23, %v5447_v6  ;;  %v1051_v27 = vpop.f32.mrb[21].mxu0  ;;  %v1616_v28 = vpack.c.bf16 %v4654_v22, %v4650_v19  ;;  %4675 = vtanh.f32 %v1255_v17 }
 0x11a   : > { %v5489_v29 = vpop.eup %4657  ;;  %v1052_v30 = vadd.f32 %v5447_v6, %v1051_v27  ;;  %v4130_v31 = vpop.f32.mrb[22].mxu0  ;;  %4677 = vtanh.f32 %v1247_v20 }
 0x11b   : > { %v5492_v33 = vpop.eup %4659  ;;  %4679 = vtanh.f32 %v1060_v26  ;;  %v1063_v34 = vadd.f32 %v4130_v31, %v5447_v6  ;;  %v1054_v35 = vpop.f32.mrb[23].mxu0  ;;  %4255 = vmatprep.mubr.msk.bf16.mxu1 %vm1713_vm1, %v1616_v28 }
 0x11c   : > { %v5497_v38 = vpop.eup %4661  ;;  %4681 = vtanh.f32 %v1052_v30  ;;  %v1055_v39 = vadd.f32 %v5447_v6, %v1054_v35  ;;  %4256 = vmatmul.mubr.msk.bf16.gmra.mrb[76].mxu1 %vm1713_vm1, %v1617_v24  ;;  %v4189_v27 = vpop.f32.mrb[16].mxu1 }
 0x11d   : > { %v4664_v43 = vpop.eup %4663  ;;  %4683 = vtanh.f32 %v1063_v34  ;;  %v1300_v32 = vadd.f32 %v4189_v27, %v5447_v6  ;;  %v1291_v34 = vpop.f32.mrb[17].mxu1 }
 0x11e   : > { %v4666_v47 = vpop.eup %4665  ;;  %4685 = vtanh.f32 %v1055_v39  ;;  %v1292_v37 = vadd.f32 %v5447_v6, %v1291_v34  ;;  %v4190_v39 = vpop.f32.mrb[18].mxu1 }
 0x11f   : > { %v4668_v49 = vpop.eup %4667  ;;  %4687 = vtanh.f32 %v1268_v36 }
 0x120   : > { %v4670_v50 = vpop.eup %4669  ;;  %v4133_v51 = vpop.f32.mrb[24].mxu0  ;;  %v1619_v52 = vpack.c.bf16 %v4668_v49, %v4664_v43  ;;  %4689 = vtanh.f32 %v1260_v40  ;;  %v1303_v43 = vadd.f32 %v4190_v39, %v5447_v6 }
 0x121   : > { %v5508_v53 = vpop.eup %4671  ;;  %v1076_v54 = vadd.f32 %v4133_v51, %v5447_v6  ;;  %v1067_v55 = vpop.f32.mrb[25].mxu0  ;;  %v1618_v56 = vpack.c.bf16 %v4670_v50, %v4666_v47  ;;  %4691 = vtanh.f32 %v1271_v44 }
 0x122   : > { %v5511_v57 = vpop.eup %4673  ;;  %v1068_v58 = vadd.f32 %v5447_v6, %v1067_v55  ;;  %v4134_v59 = vpop.f32.mrb[26].mxu0  ;;  %4693 = vtanh.f32 %v1263_v48 }
 0x123   : > { %v5514_v61 = vpop.eup %4675  ;;  %4695 = vtanh.f32 %v1076_v54  ;;  %v1079_v62 = vadd.f32 %v4134_v59, %v5447_v6  ;;  %v1070_v63 = vpop.f32.mrb[27].mxu0  ;;  %4259 = vmatprep.mubr.msk.bf16.mxu1 %vm1713_vm1, %v1618_v56 }
 0x124   : > { %v5519_v2 = vpop.eup %4677  ;;  %4697 = vtanh.f32 %v1068_v58  ;;  %v1071_v3 = vadd.f32 %v5447_v6, %v1070_v63  ;;  %4260 = vmatmul.mubr.msk.bf16.gmra.mrb[80].mxu1 %vm1713_vm1, %v1619_v52  ;;  %v1294_v44 = vpop.f32.mrb[19].mxu1 }
 0x125   : > { %v4680_v8 = vpop.eup %4679  ;;  %4699 = vtanh.f32 %v1079_v62  ;;  %v1295_v48 = vadd.f32 %v5447_v6, %v1294_v44  ;;  %v4193_v63 = vpop.f32.mrb[20].mxu1 }
 0x126   : > { %v4682_v13 = vpop.eup %4681  ;;  %4701 = vtanh.f32 %v1071_v3  ;;  %v1307_v5 = vpop.f32.mrb[21].mxu1 }
 0x127   : > { %v4684_v15 = vpop.eup %4683  ;;  %4703 = vtanh.f32 %v1284_v0  ;;  %v1308_v10 = vadd.f32 %v5447_v6, %v1307_v5  ;;  %v4194_v12 = vpop.f32.mrb[22].mxu1 }
 0x128   : > { %v4686_v16 = vpop.eup %4685  ;;  %v4137_v17 = vpop.f32.mrb[28].mxu0  ;;  %v1621_v18 = vpack.c.bf16 %v4684_v15, %v4680_v8  ;;  %4705 = vtanh.f32 %v1276_v4  ;;  %v1316_v4 = vadd.f32 %v4193_v63, %v5447_v6  ;;  %v1319_v15 = vadd.f32 %v4194_v12, %v5447_v6 }
 0x129   : > { %v5533_v19 = vpop.eup %4687  ;;  %v1092_v20 = vadd.f32 %v4137_v17, %v5447_v6  ;;  %v1083_v21 = vpop.f32.mrb[29].mxu0  ;;  %v1620_v22 = vpack.c.bf16 %v4686_v16, %v4682_v13  ;;  %4707 = vtanh.f32 %v1287_v9 }
 0x12a   : > { %v5536_v23 = vpop.eup %4689  ;;  %v1084_v24 = vadd.f32 %v5447_v6, %v1083_v21  ;;  %v4138_v26 = vpop.f32.mrb[30].mxu0  ;;  %4709 = vtanh.f32 %v1279_v14 }
 0x12b   : > { %v5539_v28 = vpop.eup %4691  ;;  %4711 = vtanh.f32 %v1092_v20  ;;  %v1095_v30 = vadd.f32 %v4138_v26, %v5447_v6  ;;  %v1086_v31 = vpop.f32.mrb[31].mxu0  ;;  %4263 = vmatprep.mubr.msk.bf16.mxu1 %vm1713_vm1, %v1620_v22 }
 0x12c   : > { %v5544_v35 = vpop.eup %4693  ;;  %4713 = vtanh.f32 %v1084_v24  ;;  %v1087_v36 = vadd.f32 %v5447_v6, %v1086_v31  ;;  %4264 = vmatmul.mubr.msk.bf16.gmra.mrb[84].mxu1 %vm1713_vm1, %v1621_v18  ;;  %v1310_v16 = vpop.f32.mrb[23].mxu1 }
 0x12d   : > { %v4696_v41 = vpop.eup %4695  ;;  %4715 = vtanh.f32 %v1095_v30  ;;  %v1311_v20 = vadd.f32 %v5447_v6, %v1310_v16  ;;  %v4197_v39 = vpop.f32.mrb[24].mxu1 }
 0x12e   : > { %v4698_v47 = vpop.eup %4697  ;;  %4717 = vtanh.f32 %v1087_v36 }
 0x12f   : > { %v4700_v49 = vpop.eup %4699  ;;  %4719 = vtanh.f32 %v1300_v32 }
 0x130   : > { %v4702_v50 = vpop.eup %4701  ;;  %v4141_v51 = vpop.f32.mrb[32].mxu0  ;;  %v1623_v52 = vpack.c.bf16 %v4700_v49, %v4696_v41  ;;  %4721 = vtanh.f32 %v1292_v37 }
 0x131   : > { %v5555_v54 = vpop.eup %4703  ;;  %v1108_v55 = vadd.f32 %v4141_v51, %v5447_v6  ;;  %v1099_v56 = vpop.f32.mrb[33].mxu0  ;;  %v1622_v58 = vpack.c.bf16 %v4702_v50, %v4698_v47  ;;  %4723 = vtanh.f32 %v1303_v43  ;;  %v1332_v47 = vadd.f32 %v4197_v39, %v5447_v6 }
 0x132   : > { %v5558_v59 = vpop.eup %4705  ;;  %v1100_v60 = vadd.f32 %v5447_v6, %v1099_v56  ;;  %v4142_v62 = vpop.f32.mrb[34].mxu0  ;;  %4725 = vtanh.f32 %v1295_v48 }
 0x133   : > { %v5561_v0 = vpop.eup %4707  ;;  %4727 = vtanh.f32 %v1108_v55  ;;  %v1111_v1 = vadd.f32 %v4142_v62, %v5447_v6  ;;  %v1102_v3 = vpop.f32.mrb[35].mxu0  ;;  %4267 = vmatprep.mubr.msk.bf16.mxu1 %vm1713_vm1, %v1622_v58 }
 0x134   : > { %v5566_v8 = vpop.eup %4709  ;;  %4729 = vtanh.f32 %v1100_v60  ;;  %v1103_v9 = vadd.f32 %v5447_v6, %v1102_v3  ;;  %4268 = vmatmul.mubr.msk.bf16.gmra.mrb[88].mxu1 %vm1713_vm1, %v1623_v52  ;;  %v1323_v48 = vpop.f32.mrb[25].mxu1 }
 0x135   : > { %v4712_v14 = vpop.eup %4711  ;;  %4731 = vtanh.f32 %v1111_v1  ;;  %v1324_v51 = vadd.f32 %v5447_v6, %v1323_v48  ;;  %v4198_v52 = vpop.f32.mrb[26].mxu1 }
 0x136   : > { %v4714_v18 = vpop.eup %4713  ;;  %4733 = vtanh.f32 %v1103_v9  ;;  %v1335_v58 = vadd.f32 %v4198_v52, %v5447_v6  ;;  %v1326_v60 = vpop.f32.mrb[27].mxu1 }
 0x137   : > { %v4716_v21 = vpop.eup %4715  ;;  %4735 = vtanh.f32 %v1316_v4  ;;  %v1327_v1 = vadd.f32 %v5447_v6, %v1326_v60 }
 0x138   : > { %v4718_v22 = vpop.eup %4717  ;;  %v4145_v24 = vpop.f32.mrb[36].mxu0  ;;  %v1625_v26 = vpack.c.bf16 %v4716_v21, %v4712_v14  ;;  %4737 = vtanh.f32 %v1308_v10 }
 0x139   : > { %v5577_v27 = vpop.eup %4719  ;;  %v1124_v30 = vadd.f32 %v4145_v24, %v5447_v6  ;;  %v1115_v31 = vpop.f32.mrb[37].mxu0  ;;  %v1624_v32 = vpack.c.bf16 %v4718_v22, %v4714_v18  ;;  %4739 = vtanh.f32 %v1319_v15 }
 0x13a   : > { %v5580_v34 = vpop.eup %4721  ;;  %v1116_v36 = vadd.f32 %v5447_v6, %v1115_v31  ;;  %v4146_v37 = vpop.f32.mrb[38].mxu0  ;;  %4741 = vtanh.f32 %v1311_v20 }
 0x13b   : > { %v5583_v41 = vpop.eup %4723  ;;  %4743 = vtanh.f32 %v1124_v30  ;;  %v1127_v43 = vadd.f32 %v4146_v37, %v5447_v6  ;;  %v1118_v44 = vpop.f32.mrb[39].mxu0  ;;  %4271 = vmatprep.mubr.msk.bf16.mxu1 %vm1713_vm1, %v1624_v32 }
 0x13c   : > { %v5588_v49 = vpop.eup %4725  ;;  %4745 = vtanh.f32 %v1116_v36  ;;  %v1119_v50 = vadd.f32 %v5447_v6, %v1118_v44  ;;  %4272 = vmatmul.mubr.msk.bf16.gmra.mrb[92].mxu1 %vm1713_vm1, %v1625_v26  ;;  %v4201_v21 = vpop.f32.mrb[28].mxu1 }
 0x13d   : > { %v4728_v56 = vpop.eup %4727  ;;  %4747 = vtanh.f32 %v1127_v43  ;;  %v1348_v30 = vadd.f32 %v4201_v21, %v5447_v6  ;;  %v1339_v31 = vpop.f32.mrb[29].mxu1 }
 0x13e   : > { %v4730_v63 = vpop.eup %4729  ;;  %4749 = vtanh.f32 %v1119_v50  ;;  %v1340_v37 = vadd.f32 %v5447_v6, %v1339_v31  ;;  %v4202_v39 = vpop.f32.mrb[30].mxu1 }
 0x13f   : > { %v4732_v3 = vpop.eup %4731  ;;  %4751 = vtanh.f32 %v1332_v47  ;;  %v1351_v47 = vadd.f32 %v4202_v39, %v5447_v6  ;;  %v1342_v48 = vpop.f32.mrb[31].mxu1 }
 0x140   : > { %v4734_v4 = vpop.eup %4733  ;;  %v4149_v5 = vpop.f32.mrb[40].mxu0  ;;  %v1627_v9 = vpack.c.bf16 %v4732_v3, %v4728_v56  ;;  %4753 = vtanh.f32 %v1324_v51  ;;  %v4622_v51 = vld [vmem:[%s6468_s5 + $0x18] sm:$0xff]   ;;  %v1343_v56 = vadd.f32 %v5447_v6, %v1342_v48 }
 0x141   : > { %v5599_v10 = vpop.eup %4735  ;;  %v1140_v12 = vadd.f32 %v4149_v5, %v5447_v6  ;;  %v1131_v14 = vpop.f32.mrb[41].mxu0  ;;  %v1626_v15 = vpack.c.bf16 %v4734_v4, %v4730_v63  ;;  %4755 = vtanh.f32 %v1335_v58  ;;  %4377 = vmatprep.subr.bf16.mxu0 %v4622_v51 }
 0x142   : > { %v5602_v16 = vpop.eup %4737  ;;  %v1132_v18 = vadd.f32 %v5447_v6, %v1131_v14  ;;  %v4150_v20 = vpop.f32.mrb[42].mxu0  ;;  %4757 = vtanh.f32 %v1327_v1  ;;  %4378 = vmatpush3.bf16.msra.mxu0 %v4622_v51 }
 0x143   : > { %v5605_v22 = vpop.eup %4739  ;;  %4759 = vtanh.f32 %v1140_v12  ;;  %v1143_v24 = vadd.f32 %v4150_v20, %v5447_v6  ;;  %v1134_v26 = vpop.f32.mrb[43].mxu0  ;;  %4275 = vmatprep.mubr.msk.bf16.mxu1 %vm1713_vm1, %v1626_v15 }
 0x144   : > { %v5610_v32 = vpop.eup %4741  ;;  %4761 = vtanh.f32 %v1132_v18  ;;  %v1135_v36 = vadd.f32 %v5447_v6, %v1134_v26  ;;  %4276 = vmatmul.mubr.msk.bf16.gmra.mrb[96].mxu1 %vm1713_vm1, %v1627_v9  ;;  %v4205_v18 = vpop.f32.mrb[32].mxu1 }
 0x145   : > { %v4744_v44 = vpop.eup %4743  ;;  %4763 = vtanh.f32 %v1143_v24  ;;  %v1364_v26 = vadd.f32 %v4205_v18, %v5447_v6 }
 0x146   : > { %v4746_v52 = vpop.eup %4745  ;;  %4765 = vtanh.f32 %v1135_v36 }
 0x147   : > { %v4748_v58 = vpop.eup %4747  ;;  %4767 = vtanh.f32 %v1348_v30  ;;  %v1355_v30 = vpop.f32.mrb[33].mxu1 }
 0x148   : > { %v4750_v60 = vpop.eup %4749  ;;  %v4153_v63 = vpop.f32.mrb[44].mxu0  ;;  %v1629_v1 = vpack.c.bf16 %v4748_v58, %v4744_v44  ;;  %4769 = vtanh.f32 %v1340_v37  ;;  %v1356_v37 = vadd.f32 %v5447_v6, %v1355_v30 }
 0x149   : > { %v5624_v3 = vpop.eup %4751  ;;  %v1156_v4 = vadd.f32 %v4153_v63, %v5447_v6  ;;  %v1147_v5 = vpop.f32.mrb[45].mxu0  ;;  %v1628_v9 = vpack.c.bf16 %v4750_v60, %v4746_v52  ;;  %4771 = vtanh.f32 %v1351_v47 }
 0x14a   : > { %v5627_v12 = vpop.eup %4753  ;;  %v1148_v14 = vadd.f32 %v5447_v6, %v1147_v5  ;;  %v4154_v15 = vpop.f32.mrb[46].mxu0  ;;  %4773 = vtanh.f32 %v1343_v56 }
 0x14b   : > { %v5630_v20 = vpop.eup %4755  ;;  %4775 = vtanh.f32 %v1156_v4  ;;  %v1159_v21 = vadd.f32 %v4154_v15, %v5447_v6  ;;  %v1150_v24 = vpop.f32.mrb[47].mxu0  ;;  %4279 = vmatprep.mubr.msk.bf16.mxu1 %vm1713_vm1, %v1628_v9 }
 0x14c   : > { %v5635_v31 = vpop.eup %4757  ;;  %4777 = vtanh.f32 %v1148_v14  ;;  %v1151_v36 = vadd.f32 %v5447_v6, %v1150_v24  ;;  %4280 = vmatmul.mubr.msk.bf16.gmra.mrb[100].mxu1 %vm1713_vm1, %v1629_v1  ;;  %v4206_v39 = vpop.f32.mrb[34].mxu1 }
 0x14d   : > { %v4760_v47 = vpop.eup %4759  ;;  %4779 = vtanh.f32 %v1159_v21  ;;  %v1367_v48 = vadd.f32 %v4206_v39, %v5447_v6  ;;  %v1358_v51 = vpop.f32.mrb[35].mxu1 }
 0x14e   : > { %v4762_v56 = vpop.eup %4761  ;;  %4781 = vtanh.f32 %v1151_v36  ;;  %v1359_v58 = vadd.f32 %v5447_v6, %v1358_v51  ;;  %v4209_v30 = vpop.f32.mrb[36].mxu1 }
 0x14f   : > { %v4764_v60 = vpop.eup %4763  ;;  %4783 = vtanh.f32 %v1364_v26  ;;  %v1380_v39 = vadd.f32 %v4209_v30, %v5447_v6 }
 0x150   : > { %v4766_v63 = vpop.eup %4765  ;;  %v4157_v1 = vpop.f32.mrb[48].mxu0  ;;  %v1631_v4 = vpack.c.bf16 %v4764_v60, %v4760_v47  ;;  %4785 = vtanh.f32 %v1356_v37 }
 0x151   : > { %v5646_v5 = vpop.eup %4767  ;;  %v1172_v9 = vadd.f32 %v4157_v1, %v5447_v6  ;;  %v1163_v14 = vpop.f32.mrb[49].mxu0  ;;  %v1630_v15 = vpack.c.bf16 %v4766_v63, %v4762_v56  ;;  %4787 = vtanh.f32 %v1367_v48 }
 0x152   : > { %v5649_v18 = vpop.eup %4769  ;;  %v1164_v21 = vadd.f32 %v5447_v6, %v1163_v14  ;;  %v4158_v24 = vpop.f32.mrb[50].mxu0  ;;  %4789 = vtanh.f32 %v1359_v58 }
 0x153   : > { %v5652_v36 = vpop.eup %4771  ;;  %4791 = vtanh.f32 %v1172_v9  ;;  %v1175_v26 = vadd.f32 %v4158_v24, %v5447_v6  ;;  %v1166_v37 = vpop.f32.mrb[51].mxu0  ;;  %4283 = vmatprep.mubr.msk.bf16.mxu1 %vm1713_vm1, %v1630_v15 }
 0x154   : > { %v1371_v47 = vpop.f32.mrb[37].mxu1  ;;  %v5657_v51 = vpop.eup %4773  ;;  %4793 = vtanh.f32 %v1164_v21  ;;  %v1167_v48 = vadd.f32 %v5447_v6, %v1166_v37  ;;  %4284 = vmatmul.mubr.msk.bf16.gmra.mrb[104].mxu1 %vm1713_vm1, %v1631_v4 }
 0x155   : > { %v1372_v56 = vadd.f32 %v5447_v6, %v1371_v47  ;;  %v4210_v58 = vpop.f32.mrb[38].mxu1  ;;  %v4776_v63 = vpop.eup %4775  ;;  %4795 = vtanh.f32 %v1175_v26 }
 0x156   : > { %v1383_v1 = vadd.f32 %v4210_v58, %v5447_v6  ;;  %v1374_v9 = vpop.f32.mrb[39].mxu1  ;;  %v4778_v15 = vpop.eup %4777  ;;  %4797 = vtanh.f32 %v1167_v48 }
 0x157   : > { %v1375_v21 = vadd.f32 %v5447_v6, %v1374_v9  ;;  %v4780_v24 = vpop.eup %4779  ;;  %4799 = vtanh.f32 %v1380_v39  ;;  %v4213_v9 = vpop.f32.mrb[40].mxu1 }
 0x158   : > { %v4782_v4 = vpop.eup %4781  ;;  %v4161_v30 = vpop.f32.mrb[52].mxu0  ;;  %v1633_v37 = vpack.c.bf16 %v4780_v24, %v4776_v63  ;;  %4801 = vtanh.f32 %v1372_v56  ;;  %v1396_v63 = vadd.f32 %v4213_v9, %v5447_v6 }
 0x159   : > { %v5668_v47 = vpop.eup %4783  ;;  %v1188_v26 = vadd.f32 %v4161_v30, %v5447_v6  ;;  %v1179_v60 = vpop.f32.mrb[53].mxu0  ;;  %v1632_v58 = vpack.c.bf16 %v4782_v4, %v4778_v15  ;;  %4803 = vtanh.f32 %v1383_v1 }
 0x15a   : > { %v5671_v44 = vpop.eup %4785  ;;  %v1180_v14 = vadd.f32 %v5447_v6, %v1179_v60  ;;  %v4162_v48 = vpop.f32.mrb[54].mxu0  ;;  %4805 = vtanh.f32 %v1375_v21 }
 0x15b   : > { %v5674_v52 = vpop.eup %4787  ;;  %4807 = vtanh.f32 %v1188_v26  ;;  %v1191_v39 = vadd.f32 %v4162_v48, %v5447_v6  ;;  %v1182_v56 = vpop.f32.mrb[55].mxu0  ;;  %4287 = vmatprep.mubr.msk.bf16.mxu1 %vm1713_vm1, %v1632_v58 }
 0x15c   : > { %v1387_v24 = vpop.f32.mrb[41].mxu1  ;;  %v5679_v15 = vpop.eup %4789  ;;  %4809 = vtanh.f32 %v1180_v14  ;;  %v1183_v1 = vadd.f32 %v5447_v6, %v1182_v56  ;;  %4288 = vmatmul.mubr.msk.bf16.gmra.mrb[108].mxu1 %vm1713_vm1, %v1633_v37 }
 0x15d   : > { %v1388_v60 = vadd.f32 %v5447_v6, %v1387_v24  ;;  %v4214_v21 = vpop.f32.mrb[42].mxu1  ;;  %v4792_v30 = vpop.eup %4791  ;;  %4811 = vtanh.f32 %v1191_v39 }
 0x15e   : > { %v1399_v26 = vadd.f32 %v4214_v21, %v5447_v6  ;;  %v1390_v58 = vpop.f32.mrb[43].mxu1  ;;  %v4794_v9 = vpop.eup %4793  ;;  %4813 = vtanh.f32 %v1183_v1 }
 0x15f   : > { %v1391_v14 = vadd.f32 %v5447_v6, %v1390_v58  ;;  %v4796_v56 = vpop.eup %4795  ;;  %4815 = vtanh.f32 %v1396_v63  ;;  %v4217_v58 = vpop.f32.mrb[44].mxu1 }
 0x160   : > { %v4798_v37 = vpop.eup %4797  ;;  %v4165_v24 = vpop.f32.mrb[56].mxu0  ;;  %v1635_v43 = vpack.c.bf16 %v4796_v56, %v4792_v30  ;;  %4817 = vtanh.f32 %v1388_v60  ;;  %v1412_v30 = vadd.f32 %v4217_v58, %v5447_v6 }
 0x161   : > { %v5690_v50 = vpop.eup %4799  ;;  %v1204_v39 = vadd.f32 %v4165_v24, %v5447_v6  ;;  %v1195_v4 = vpop.f32.mrb[57].mxu0  ;;  %v1634_v21 = vpack.c.bf16 %v4798_v37, %v4794_v9  ;;  %4819 = vtanh.f32 %v1399_v26 }
 0x162   : > { %v5693_v55 = vpop.eup %4801  ;;  %v1196_v48 = vadd.f32 %v5447_v6, %v1195_v4  ;;  %v4166_v1 = vpop.f32.mrb[58].mxu0  ;;  %4821 = vtanh.f32 %v1391_v14 }
 0x163   : > { %v5696_v62 = vpop.eup %4803  ;;  %4823 = vtanh.f32 %v1204_v39  ;;  %v1207_v63 = vadd.f32 %v4166_v1, %v5447_v6  ;;  %v1198_v60 = vpop.f32.mrb[59].mxu0  ;;  %4291 = vmatprep.mubr.msk.bf16.mxu1 %vm1713_vm1, %v1634_v21 }
 0x164   : > { %v1403_v56 = vpop.f32.mrb[45].mxu1  ;;  %v5701_v9 = vpop.eup %4805  ;;  %4825 = vtanh.f32 %v1196_v48  ;;  %v1199_v26 = vadd.f32 %v5447_v6, %v1198_v60  ;;  %4292 = vmatmul.mubr.msk.bf16.gmra.mrb[112].mxu1 %vm1713_vm1, %v1635_v43 }
 0x165   : > { %v1404_v4 = vadd.f32 %v5447_v6, %v1403_v56  ;;  %v4218_v14 = vpop.f32.mrb[46].mxu1  ;;  %v4808_v24 = vpop.eup %4807  ;;  %4827 = vtanh.f32 %v1207_v63 }
 0x166   : > { %v1415_v39 = vadd.f32 %v4218_v14, %v5447_v6  ;;  %v1406_v21 = vpop.f32.mrb[47].mxu1  ;;  %v4810_v58 = vpop.eup %4809  ;;  %4829 = vtanh.f32 %v1199_v26 }
 0x167   : > { %v1407_v48 = vadd.f32 %v5447_v6, %v1406_v21  ;;  %v4812_v60 = vpop.eup %4811  ;;  %4831 = vtanh.f32 %v1412_v30  ;;  %v4221_v21 = vpop.f32.mrb[48].mxu1  ;;  %v5723_v30 = vld [vmem:[%s6465_s2] ss:$0 sm:$0xff] }
 0x168   : > { %v4814_v43 = vpop.eup %4813  ;;  %v4169_v56 = vpop.f32.mrb[60].mxu0  ;;  %v1637_v13 = vpack.c.bf16 %v4812_v60, %v4808_v24  ;;  %4833 = vtanh.f32 %v1404_v4 }
 0x169   : > { %v5712_v17 = vpop.eup %4815  ;;  %v1220_v63 = vadd.f32 %v4169_v56, %v5447_v6  ;;  %v1211_v37 = vpop.f32.mrb[61].mxu0  ;;  %v1636_v14 = vpack.c.bf16 %v4814_v43, %v4810_v58  ;;  %4835 = vtanh.f32 %v1415_v39  ;;  %v1428_v39 = vadd.f32 %v5723_v30, %v4221_v21 }
 0x16a   : > { %v5715_v40 = vpop.eup %4817  ;;  %v1212_v1 = vadd.f32 %v5447_v6, %v1211_v37  ;;  %v4170_v26 = vpop.f32.mrb[62].mxu0  ;;  %4837 = vtanh.f32 %v1407_v48 }
 0x16b   : > { %v5718_v45 = vpop.eup %4819  ;;  %4839 = vtanh.f32 %v1220_v63  ;;  %v1223_v4 = vadd.f32 %v5723_v30, %v4170_v26  ;;  %v1214_v24 = vpop.f32.mrb[63].mxu0  ;;  %4295 = vmatprep.mubr.msk.bf16.mxu1 %vm1713_vm1, %v1636_v14 }
 0x16c   : > { %v1419_v58 = vpop.f32.mrb[49].mxu1  ;;  %v5728_v6 = vpop.eup %4821  ;;  %4841 = vtanh.f32 %v1212_v1  ;;  %v1215_v37 = vadd.f32 %v5723_v30, %v1214_v24  ;;  %4296 = vmatmul.mubr.msk.bf16.gmra.mrb[116].mxu1 %vm1713_vm1, %v1637_v13 }
 0x16d   : > { %v1420_v48 = vadd.f32 %v5723_v30, %v1419_v58  ;;  %v4222_v60 = vpop.f32.mrb[50].mxu1  ;;  %v4824_v56 = vpop.eup %4823  ;;  %4843 = vtanh.f32 %v1223_v4 }
 0x16e   : > { %v1431_v63 = vadd.f32 %v5723_v30, %v4222_v60  ;;  %v1422_v14 = vpop.f32.mrb[51].mxu1  ;;  %v4826_v21 = vpop.eup %4825  ;;  %4845 = vtanh.f32 %v1215_v37 }
 0x16f   : > { %v1423_v1 = vadd.f32 %v5723_v30, %v1422_v14  ;;  %v4828_v24 = vpop.eup %4827  ;;  %4847 = vtanh.f32 %v1428_v39  ;;  %v4225_v60 = vpop.f32.mrb[52].mxu1 }
 0x170   : > { %v4830_v13 = vpop.eup %4829  ;;  %v1639_v58 = vpack.c.bf16 %v4828_v24, %v4824_v56  ;;  %4849 = vtanh.f32 %v1420_v48  ;;  %v1444_v37 = vadd.f32 %v5723_v30, %v4225_v60  ;;  %v1435_v14 = vpop.f32.mrb[53].mxu1 }
 0x171   : > { %v5739_v7 = vpop.eup %4831  ;;  %v1638_v43 = vpack.c.bf16 %v4830_v13, %v4826_v21  ;;  %4851 = vtanh.f32 %v1431_v63  ;;  %v1436_v39 = vadd.f32 %v5723_v30, %v1435_v14  ;;  %v4226_v48 = vpop.f32.mrb[54].mxu1 }
 0x172   : > { %6474 = vst [vmem:[#allocation5_spill] sm:$0xff] %v5739_v7  ;;  %v5741_v4 = vpop.eup %4833  ;;  %4853 = vtanh.f32 %v1423_v1  ;;  %v1447_v21 = vadd.f32 %v5723_v30, %v4226_v48  ;;  %v1438_v1 = vpop.f32.mrb[55].mxu1 }
 0x173   : > { %v5743_v11 = vpop.eup %4835  ;;  %4299 = vmatprep.mubr.msk.bf16.mxu1 %vm1713_vm1, %v1638_v43  ;;  %4855 = vtanh.f32 %v1444_v37  ;;  %v1439_v13 = vadd.f32 %v5723_v30, %v1438_v1  ;;  %v4229_v37 = vpop.f32.mrb[56].mxu1  ;;  %v6477_v1 = vpack.c.bf16 %v5519_v2, %v5511_v57 }
 0x174   : > { %v5747_v26 = vpop.eup %4837  ;;  %4300 = vmatmul.mubr.msk.bf16.gmra.mrb[120].mxu1 %vm1713_vm1, %v1639_v58  ;;  %4857 = vtanh.f32 %v1436_v39  ;;  %v1460_v43 = vadd.f32 %v5723_v30, %v4229_v37  ;;  %v1451_v39 = vpop.f32.mrb[57].mxu1 }
 0x175   : > { %v4840_v63 = vpop.eup %4839  ;;  %4859 = vtanh.f32 %v1447_v21  ;;  %v4230_v21 = vpop.f32.mrb[58].mxu1 }
 0x176   : > { %v4842_v24 = vpop.eup %4841  ;;  %4861 = vtanh.f32 %v1439_v13  ;;  %v1454_v13 = vpop.f32.mrb[59].mxu1 }
 0x177   : > { %v4844_v60 = vpop.eup %4843  ;;  %4863 = vtanh.f32 %v1460_v43 }
 0x178   : > { %v4846_v58 = vpop.eup %4845  ;;  %v1641_v14 = vpack.c.bf16 %v4844_v60, %v4840_v63  ;;  %v1452_v63 = vadd.f32 %v5723_v30, %v1451_v39 }
 0x179   : > { %v5757_v42 = vpop.eup %4847  ;;  %v1640_v56 = vpack.c.bf16 %v4846_v58, %v4842_v24  ;;  %v6475_v24 = vpack.c.bf16 %v5497_v38, %v5489_v29  ;;  %v1455_v58 = vadd.f32 %v5723_v30, %v1454_v13  ;;  %v4233_v38 = vpop.f32.mrb[60].mxu1 }
 0x17a   : > { %v5759_v46 = vpop.eup %4849  ;;  %4865 = vtanh.f32 %v1452_v63 }
 0x17b   : > { %v5761_v48 = vpop.eup %4851  ;;  %4303 = vmatprep.mubr.msk.bf16.mxu1 %vm1713_vm1, %v1640_v56  ;;  %v1463_v56 = vadd.f32 %v5723_v30, %v4230_v21  ;;  %v1476_v21 = vadd.f32 %v5723_v30, %v4233_v38 }
 0x17c   : > { %v5765_v7 = vpop.eup %4853  ;;  %4304 = vmatmul.mubr.msk.bf16.gmra.mrb[124].mxu1 %vm1713_vm1, %v1641_v14 }
 0x17d   : > { %4307 = vmatprep.mubr.msk.bf16.mxu1 %vm1713_vm1, %v6475_v24  ;;  %v5779_v14 = vpop.eup %4855  ;;  %4867 = vtanh.f32 %v1463_v56  ;;  %v1467_v24 = vpop.f32.mrb[61].mxu1  ;;  %v6476_v56 = vpack.c.bf16 %v5492_v33, %v5486_v25 }
 0x17e   : > { %v5781_v37 = vpop.eup %4857  ;;  %4869 = vtanh.f32 %v1455_v58  ;;  %v1468_v13 = vadd.f32 %v5723_v30, %v1467_v24  ;;  %v4234_v58 = vpop.f32.mrb[62].mxu1 }
 0x17f   : > { %v5783_v39 = vpop.eup %4859  ;;  %4871 = vtanh.f32 %v1476_v21  ;;  %v1479_v38 = vadd.f32 %v5723_v30, %v4234_v58  ;;  %v1470_v43 = vpop.f32.mrb[63].mxu1  ;;  %v6483_v58 = vpack.c.bf16 %v5588_v49, %v5580_v34  ;;  %v6491_v34 = vpack.c.bf16 %v5679_v15, %v5671_v44 }
 0x180   : > { %v5785_v29 = vpop.eup %4861  ;;  %4873 = vtanh.f32 %v1468_v13  ;;  %v1471_v63 = vadd.f32 %v5723_v30, %v1470_v43  ;;  %v6479_v30 = vpack.c.bf16 %v5544_v35, %v5536_v23  ;;  %v6481_v23 = vpack.c.bf16 %v5566_v8, %v5558_v59 }
 0x181   : > { %v5803_v60 = vpop.eup %4863  ;;  %4875 = vtanh.f32 %v1479_v38  ;;  %v6482_v35 = vpack.c.bf16 %v5561_v0, %v5555_v54  ;;  %v6486_v54 = vpack.c.bf16 %v5605_v22, %v5599_v10  ;;  %v6487_v59 = vpack.c.bf16 %v5635_v31, %v5627_v12  ;;  %v6498_v31 = vld [vmem:[#allocation5_spill] sm:$0xff] }
 0x182   : > { %4877 = vtanh.f32 %v1471_v63  ;;  %v6488_v0 = vpack.c.bf16 %v5630_v20, %v5624_v3  ;;  %v6489_v8 = vpack.c.bf16 %v5657_v51, %v5649_v18  ;;  %v6493_v49 = vpack.c.bf16 %v5701_v9, %v5693_v55 }
 0x183   : > { %v6494_v10 = vpack.c.bf16 %v5696_v62, %v5690_v50  ;;  %v6496_v22 = vpack.c.bf16 %v5718_v45, %v5712_v17  ;;  %v6497_v55 = vpack.c.bf16 %v5747_v26, %v5741_v4  ;;  %v5910_v62 = vld [vmem:[%s6467_s4] ss:$0 sm:$0xff]  ;;  %v6499_v44 = vpack.c.bf16 %v5743_v11, %v6498_v31 }
 0x184   : > { %4308 = vmatmul.mubr.msk.bf16.gmra.mrb[128].mxu1 %vm1713_vm1, %v6476_v56  ;;  %v5805_v25 = vpop.eup %4865  ;;  %v6502_v26 = vpack.c.bf16 %v5785_v29, %v5781_v37 }
 0x185   : > { %4311 = vmatprep.mubr.msk.bf16.mxu1 %vm1713_vm1, %v6477_v1  ;;  %v6478_v1 = vpack.c.bf16 %v5514_v61, %v5508_v53  ;;  %v6480_v61 = vpack.c.bf16 %v5539_v28, %v5533_v19  ;;  %v6484_v19 = vpack.c.bf16 %v5583_v41, %v5577_v27  ;;  %v6485_v28 = vpack.c.bf16 %v5610_v32, %v5602_v16 }
 0x186   : > { %v6490_v27 = vpack.c.bf16 %v5652_v36, %v5646_v5  ;;  %v6492_v41 = vpack.c.bf16 %v5674_v52, %v5668_v47  ;;  %v6495_v16 = vpack.c.bf16 %v5728_v6, %v5715_v40  ;;  %v6500_v52 = vpack.c.bf16 %v5765_v7, %v5759_v46 }
 0x187   : > { %v5807_v33 = vpop.eup %4867  ;;  %v6501_v46 = vpack.c.bf16 %v5761_v48, %v5757_v42 }
 0x188   : > { %v5809_v24 = vpop.eup %4869  ;;  %v1671_v57 = vpack.c.bf16 %v5807_v33, %v5803_v60 }
 0x189   : > { %v1670_v2 = vpack.c.bf16 %v5809_v24, %v5805_v25  ;;  %v5823_v43 = vpop.eup %4871 }
 0x18a   : > { %v5825_v21 = vpop.eup %4873 }
 0x18b   : > { %v5827_v63 = vpop.eup %4875 }
 0x18c   : > { %4312 = vmatmul.mubr.msk.bf16.gmra.mrb[132].mxu1 %vm1713_vm1, %v6478_v1  ;;  %v5829_v56 = vpop.eup %4877  ;;  %v1673_v13 = vpack.c.bf16 %v5827_v63, %v5823_v43 }
 0x18d   : > { %4315 = vmatprep.mubr.msk.bf16.mxu1 %vm1713_vm1, %v6479_v30  ;;  %v1672_v53 = vpack.c.bf16 %v5829_v56, %v5825_v21 }
 0x194   : > { %4316 = vmatmul.mubr.msk.bf16.gmra.mrb[136].mxu1 %vm1713_vm1, %v6480_v61 }
 0x195   : > { %4319 = vmatprep.mubr.msk.bf16.mxu1 %vm1713_vm1, %v6481_v23 }
 0x19c   : > { %4320 = vmatmul.mubr.msk.bf16.gmra.mrb[140].mxu1 %vm1713_vm1, %v6482_v35 }
 0x19d   : > { %4323 = vmatprep.mubr.msk.bf16.mxu1 %vm1713_vm1, %v6483_v58 }
 0x1a4   : > { %4324 = vmatmul.mubr.msk.bf16.gmra.mrb[144].mxu1 %vm1713_vm1, %v6484_v19 }
 0x1a5   : > { %4327 = vmatprep.mubr.msk.bf16.mxu1 %vm1713_vm1, %v6485_v28  ;;  %v6503_v28 = vpack.c.bf16 %v5783_v39, %v5779_v14 }
 0x1ac   : > { %4328 = vmatmul.mubr.msk.bf16.gmra.mrb[148].mxu1 %vm1713_vm1, %v6486_v54 }
 0x1ad   : > { %4331 = vmatprep.mubr.msk.bf16.mxu1 %vm1713_vm1, %v6487_v59 }
 0x1b4   : > { %4332 = vmatmul.mubr.msk.bf16.gmra.mrb[152].mxu1 %vm1713_vm1, %v6488_v0 }
 0x1b5   : > { %4335 = vmatprep.mubr.msk.bf16.mxu1 %vm1713_vm1, %v6489_v8 }
 0x1bc   : > { %4336 = vmatmul.mubr.msk.bf16.gmra.mrb[156].mxu1 %vm1713_vm1, %v6490_v27 }
 0x1bd   : > { %4339 = vmatprep.mubr.msk.bf16.mxu1 %vm1713_vm1, %v6491_v34 }
 0x1c4   : > { %4340 = vmatmul.mubr.msk.bf16.gmra.mrb[160].mxu1 %vm1713_vm1, %v6492_v41 }
 0x1c5   : > { %4343 = vmatprep.mubr.msk.bf16.mxu1 %vm1713_vm1, %v6493_v49 }
 0x1cc   : > { %4344 = vmatmul.mubr.msk.bf16.gmra.mrb[164].mxu1 %vm1713_vm1, %v6494_v10 }
 0x1cd   : > { %4347 = vmatprep.mubr.msk.bf16.mxu1 %vm1713_vm1, %v6495_v16 }
 0x1d4   : > { %4348 = vmatmul.mubr.msk.bf16.gmra.mrb[168].mxu1 %vm1713_vm1, %v6496_v22 }
 0x1d5   : > { %4351 = vmatprep.mubr.msk.bf16.mxu1 %vm1713_vm1, %v6497_v55 }
 0x1d7   : > { %v4245_v32 = vpop.f32.mrb[64].mxu1 }
 0x1d8   : > { %v1949_v40 = vadd.f32 %v4245_v32, %v5910_v62  ;;  %v1940_v50 = vpop.f32.mrb[65].mxu1 }
 0x1d9   : > { %v1941_v3 = vadd.f32 %v5910_v62, %v1940_v50  ;;  %v4246_v12 = vpop.f32.mrb[66].mxu1 }
 0x1da   : > { %4879 = vtanh.f32 %v1949_v40  ;;  %v1952_v45 = vadd.f32 %v4246_v12, %v5910_v62  ;;  %v1943_v17 = vpop.f32.mrb[67].mxu1 }
 0x1db   : > { %4881 = vtanh.f32 %v1941_v3  ;;  %v1944_v20 = vadd.f32 %v5910_v62, %v1943_v17 }
 0x1dc   : > { %4883 = vtanh.f32 %v1952_v45  ;;  %4352 = vmatmul.mubr.msk.bf16.gmra.mrb[172].mxu1 %vm1713_vm1, %v6499_v44 }
 0x1dd   : > { %4885 = vtanh.f32 %v1944_v20  ;;  %4355 = vmatprep.mubr.msk.bf16.mxu1 %vm1713_vm1, %v6500_v52 }
 0x1df   : > { %v4249_v5 = vpop.f32.mrb[68].mxu1 }
 0x1e0   : > { %v1965_v18 = vadd.f32 %v4249_v5, %v5910_v62  ;;  %v1956_v36 = vpop.f32.mrb[69].mxu1 }
 0x1e1   : > { %v1957_v51 = vadd.f32 %v5910_v62, %v1956_v36  ;;  %v4250_v47 = vpop.f32.mrb[70].mxu1 }
 0x1e2   : > { %4887 = vtanh.f32 %v1965_v18  ;;  %v1968_v15 = vadd.f32 %v4250_v47, %v5910_v62  ;;  %v1959_v9 = vpop.f32.mrb[71].mxu1 }
 0x1e3   : > { %4889 = vtanh.f32 %v1957_v51  ;;  %v1960_v11 = vadd.f32 %v5910_v62, %v1959_v9 }
 0x1e4   : > { %v4880_v6 = vpop.eup %4879  ;;  %4891 = vtanh.f32 %v1968_v15  ;;  %4356 = vmatmul.mubr.msk.bf16.gmra.mrb[176].mxu1 %vm1713_vm1, %v6501_v46 }
 0x1e5   : > { %v4882_v7 = vpop.eup %4881  ;;  %4893 = vtanh.f32 %v1960_v11  ;;  %4359 = vmatprep.mubr.msk.bf16.mxu1 %vm1713_vm1, %v6502_v26 }
 0x1e6   : > { %v4884_v4 = vpop.eup %4883 }
 0x1e7   : > { %v4886_v38 = vpop.eup %4885  ;;  %v2580_v1 = vpack.c.bf16 %v4884_v4, %v4880_v6  ;;  %v4253_v30 = vpop.f32.mrb[72].mxu1 }
 0x1e8   : > { %v1981_v61 = vadd.f32 %v4253_v30, %v5910_v62  ;;  %v1972_v23 = vpop.f32.mrb[73].mxu1  ;;  %v2579_v35 = vpack.c.bf16 %v4886_v38, %v4882_v7 }
 0x1e9   : > { %v1973_v58 = vadd.f32 %v5910_v62, %v1972_v23  ;;  %v4254_v42 = vpop.f32.mrb[74].mxu1 }
 0x1ea   : > { %4895 = vtanh.f32 %v1981_v61  ;;  %v1984_v48 = vadd.f32 %v4254_v42, %v5910_v62  ;;  %v1975_v19 = vpop.f32.mrb[75].mxu1  ;;  %4379 = vmatprep.mubr.msk.bf16.mxu0 %vm1713_vm1, %v2579_v35 }
 0x1eb   : > { %4897 = vtanh.f32 %v1973_v58  ;;  %v1976_v37 = vadd.f32 %v5910_v62, %v1975_v19  ;;  %4380 = vmatmul.mubr.msk.bf16.vlgmr.msra.gmra.mrb[64].mxu0 %vm1713_vm1, %v2580_v1 }
 0x1ec   : > { %v4888_v29 = vpop.eup %4887  ;;  %4899 = vtanh.f32 %v1984_v48  ;;  %4360 = vmatmul.mubr.msk.bf16.gmra.mrb[180].mxu1 %vm1713_vm1, %v6503_v28 }
 0x1ed   : > { %v4890_v54 = vpop.eup %4889  ;;  %4901 = vtanh.f32 %v1976_v37  ;;  %4363 = vmatprep.mubr.msk.bf16.mxu1 %vm1713_vm1, %v1670_v2 }
 0x1ee   : > { %v4892_v59 = vpop.eup %4891 }
 0x1ef   : > { %v4894_v0 = vpop.eup %4893  ;;  %v4257_v8 = vpop.f32.mrb[76].mxu1  ;;  %v2582_v27 = vpack.c.bf16 %v4892_v59, %v4888_v29 }
 0x1f0   : > { %v1997_v34 = vadd.f32 %v4257_v8, %v5910_v62  ;;  %v1988_v41 = vpop.f32.mrb[77].mxu1  ;;  %v2581_v49 = vpack.c.bf16 %v4894_v0, %v4890_v54 }
 0x1f1   : > { %v1989_v10 = vadd.f32 %v5910_v62, %v1988_v41  ;;  %v4258_v14 = vpop.f32.mrb[78].mxu1 }
 0x1f2   : > { %4903 = vtanh.f32 %v1997_v34  ;;  %v2000_v39 = vadd.f32 %v4258_v14, %v5910_v62  ;;  %v1991_v16 = vpop.f32.mrb[79].mxu1  ;;  %4383 = vmatprep.mubr.msk.bf16.mxu0 %vm1713_vm1, %v2581_v49 }
 0x1f3   : > { %4905 = vtanh.f32 %v1989_v10  ;;  %v1992_v25 = vadd.f32 %v5910_v62, %v1991_v16  ;;  %4384 = vmatmul.mubr.msk.bf16.gmra.mrb[68].mxu0 %vm1713_vm1, %v2582_v27 }
 0x1f4   : > { %v4896_v24 = vpop.eup %4895  ;;  %4907 = vtanh.f32 %v2000_v39  ;;  %4364 = vmatmul.mubr.msk.bf16.gmra.mrb[184].mxu1 %vm1713_vm1, %v1671_v57 }
 0x1f5   : > { %v4898_v2 = vpop.eup %4897  ;;  %4909 = vtanh.f32 %v1992_v25  ;;  %4367 = vmatprep.mubr.msk.bf16.mxu1 %vm1713_vm1, %v1672_v53 }
 0x1f6   : > { %v4900_v22 = vpop.eup %4899 }
 0x1f7   : > { %v4902_v55 = vpop.eup %4901  ;;  %v4261_v32 = vpop.f32.mrb[80].mxu1  ;;  %v2584_v40 = vpack.c.bf16 %v4900_v22, %v4896_v24 }
 0x1f8   : > { %v2013_v50 = vadd.f32 %v4261_v32, %v5910_v62  ;;  %v2004_v3 = vpop.f32.mrb[81].mxu1  ;;  %v2583_v12 = vpack.c.bf16 %v4902_v55, %v4898_v2 }
 0x1f9   : > { %v2005_v45 = vadd.f32 %v5910_v62, %v2004_v3  ;;  %v4262_v60 = vpop.f32.mrb[82].mxu1 }
 0x1fa   : > { %4911 = vtanh.f32 %v2013_v50  ;;  %v2016_v33 = vadd.f32 %v4262_v60, %v5910_v62  ;;  %v2007_v57 = vpop.f32.mrb[83].mxu1  ;;  %4387 = vmatprep.mubr.msk.bf16.mxu0 %vm1713_vm1, %v2583_v12 }
 0x1fb   : > { %4913 = vtanh.f32 %v2005_v45  ;;  %v2008_v21 = vadd.f32 %v5910_v62, %v2007_v57  ;;  %4388 = vmatmul.mubr.msk.bf16.gmra.mrb[72].mxu0 %vm1713_vm1, %v2584_v40 }
 0x1fc   : > { %v4904_v56 = vpop.eup %4903  ;;  %4915 = vtanh.f32 %v2016_v33  ;;  %4368 = vmatmul.mubr.msk.bf16.gmra.mrb[188].mxu1 %vm1713_vm1, %v1673_v13 }
 0x1fd   : > { %v4906_v53 = vpop.eup %4905  ;;  %4917 = vtanh.f32 %v2008_v21 }
 0x1fe   : > { %v4908_v17 = vpop.eup %4907 }
 0x1ff   : > { %v4910_v20 = vpop.eup %4909  ;;  %v4265_v31 = vpop.f32.mrb[84].mxu1  ;;  %v2586_v44 = vpack.c.bf16 %v4908_v17, %v4904_v56 }
 0x200   : > { %v2029_v52 = vadd.f32 %v4265_v31, %v5910_v62  ;;  %v2020_v5 = vpop.f32.mrb[85].mxu1  ;;  %v2585_v18 = vpack.c.bf16 %v4910_v20, %v4906_v53 }
 0x201   : > { %v2021_v36 = vadd.f32 %v5910_v62, %v2020_v5  ;;  %v4266_v51 = vpop.f32.mrb[86].mxu1 }
 0x202   : > { %4919 = vtanh.f32 %v2029_v52  ;;  %v2032_v47 = vadd.f32 %v4266_v51, %v5910_v62  ;;  %v2023_v15 = vpop.f32.mrb[87].mxu1  ;;  %4391 = vmatprep.mubr.msk.bf16.mxu0 %vm1713_vm1, %v2585_v18 }
 0x203   : > { %4921 = vtanh.f32 %v2021_v36  ;;  %v2024_v43 = vadd.f32 %v5910_v62, %v2023_v15  ;;  %4392 = vmatmul.mubr.msk.bf16.gmra.mrb[76].mxu0 %vm1713_vm1, %v2586_v44 }
 0x204   : > { %v4912_v63 = vpop.eup %4911  ;;  %4923 = vtanh.f32 %v2032_v47 }
 0x205   : > { %v4914_v13 = vpop.eup %4913  ;;  %4925 = vtanh.f32 %v2024_v43 }
 0x206   : > { %v4916_v9 = vpop.eup %4915 }
 0x207   : > { %v4918_v11 = vpop.eup %4917  ;;  %v4269_v6 = vpop.f32.mrb[88].mxu1  ;;  %v2588_v46 = vpack.c.bf16 %v4916_v9, %v4912_v63 }
 0x208   : > { %v2045_v7 = vadd.f32 %v4269_v6, %v5910_v62  ;;  %v2036_v26 = vpop.f32.mrb[89].mxu1  ;;  %v2587_v4 = vpack.c.bf16 %v4918_v11, %v4914_v13 }
 0x209   : > { %v2037_v38 = vadd.f32 %v5910_v62, %v2036_v26  ;;  %v4270_v1 = vpop.f32.mrb[90].mxu1 }
 0x20a   : > { %4927 = vtanh.f32 %v2045_v7  ;;  %v2048_v30 = vadd.f32 %v4270_v1, %v5910_v62  ;;  %v2039_v61 = vpop.f32.mrb[91].mxu1  ;;  %4395 = vmatprep.mubr.msk.bf16.mxu0 %vm1713_vm1, %v2587_v4 }
 0x20b   : > { %4929 = vtanh.f32 %v2037_v38  ;;  %v2040_v23 = vadd.f32 %v5910_v62, %v2039_v61  ;;  %4396 = vmatmul.mubr.msk.bf16.gmra.mrb[80].mxu0 %vm1713_vm1, %v2588_v46 }
 0x20c   : > { %v4920_v35 = vpop.eup %4919  ;;  %4931 = vtanh.f32 %v2048_v30 }
 0x20d   : > { %v4922_v58 = vpop.eup %4921  ;;  %4933 = vtanh.f32 %v2040_v23 }
 0x20e   : > { %v4924_v42 = vpop.eup %4923 }
 0x20f   : > { %v4926_v48 = vpop.eup %4925  ;;  %v4273_v19 = vpop.f32.mrb[92].mxu1  ;;  %v2590_v37 = vpack.c.bf16 %v4924_v42, %v4920_v35 }
 0x210   : > { %v2061_v29 = vadd.f32 %v4273_v19, %v5910_v62  ;;  %v2052_v28 = vpop.f32.mrb[93].mxu1  ;;  %v2589_v54 = vpack.c.bf16 %v4926_v48, %v4922_v58 }
 0x211   : > { %v2053_v59 = vadd.f32 %v5910_v62, %v2052_v28  ;;  %v4274_v0 = vpop.f32.mrb[94].mxu1 }
 0x212   : > { %4935 = vtanh.f32 %v2061_v29  ;;  %v2064_v8 = vadd.f32 %v4274_v0, %v5910_v62  ;;  %v2055_v27 = vpop.f32.mrb[95].mxu1  ;;  %4399 = vmatprep.mubr.msk.bf16.mxu0 %vm1713_vm1, %v2589_v54 }
 0x213   : > { %4937 = vtanh.f32 %v2053_v59  ;;  %v2056_v34 = vadd.f32 %v5910_v62, %v2055_v27  ;;  %4400 = vmatmul.mubr.msk.bf16.gmra.mrb[84].mxu0 %vm1713_vm1, %v2590_v37 }
 0x214   : > { %v4928_v41 = vpop.eup %4927  ;;  %4939 = vtanh.f32 %v2064_v8 }
 0x215   : > { %v4930_v49 = vpop.eup %4929  ;;  %4941 = vtanh.f32 %v2056_v34 }
 0x216   : > { %v4932_v10 = vpop.eup %4931 }
 0x217   : > { %v4934_v14 = vpop.eup %4933  ;;  %v4277_v39 = vpop.f32.mrb[96].mxu1  ;;  %v2592_v16 = vpack.c.bf16 %v4932_v10, %v4928_v41 }
 0x218   : > { %v2077_v25 = vadd.f32 %v4277_v39, %v5910_v62  ;;  %v2068_v24 = vpop.f32.mrb[97].mxu1  ;;  %v2591_v2 = vpack.c.bf16 %v4934_v14, %v4930_v49 }
 0x219   : > { %v2069_v22 = vadd.f32 %v5910_v62, %v2068_v24  ;;  %v4278_v55 = vpop.f32.mrb[98].mxu1 }
 0x21a   : > { %4943 = vtanh.f32 %v2077_v25  ;;  %v2080_v32 = vadd.f32 %v4278_v55, %v5910_v62  ;;  %v2071_v40 = vpop.f32.mrb[99].mxu1  ;;  %4403 = vmatprep.mubr.msk.bf16.mxu0 %vm1713_vm1, %v2591_v2 }
 0x21b   : > { %4945 = vtanh.f32 %v2069_v22  ;;  %v2072_v50 = vadd.f32 %v5910_v62, %v2071_v40  ;;  %4404 = vmatmul.mubr.msk.bf16.gmra.mrb[88].mxu0 %vm1713_vm1, %v2592_v16 }
 0x21c   : > { %v4936_v3 = vpop.eup %4935  ;;  %4947 = vtanh.f32 %v2080_v32 }
 0x21d   : > { %v4938_v12 = vpop.eup %4937  ;;  %4949 = vtanh.f32 %v2072_v50 }
 0x21e   : > { %v4940_v45 = vpop.eup %4939 }
 0x21f   : > { %v4942_v60 = vpop.eup %4941  ;;  %v4281_v33 = vpop.f32.mrb[100].mxu1  ;;  %v2594_v57 = vpack.c.bf16 %v4940_v45, %v4936_v3 }
 0x220   : > { %v2093_v21 = vadd.f32 %v4281_v33, %v5910_v62  ;;  %v2084_v56 = vpop.f32.mrb[101].mxu1  ;;  %v2593_v53 = vpack.c.bf16 %v4942_v60, %v4938_v12 }
 0x221   : > { %v2085_v17 = vadd.f32 %v5910_v62, %v2084_v56  ;;  %v4282_v20 = vpop.f32.mrb[102].mxu1 }
 0x222   : > { %4951 = vtanh.f32 %v2093_v21  ;;  %v2096_v31 = vadd.f32 %v4282_v20, %v5910_v62  ;;  %v2087_v44 = vpop.f32.mrb[103].mxu1  ;;  %4407 = vmatprep.mubr.msk.bf16.mxu0 %vm1713_vm1, %v2593_v53 }
 0x223   : > { %4953 = vtanh.f32 %v2085_v17  ;;  %v2088_v52 = vadd.f32 %v5910_v62, %v2087_v44  ;;  %4408 = vmatmul.mubr.msk.bf16.gmra.mrb[92].mxu0 %vm1713_vm1, %v2594_v57 }
 0x224   : > { %v4944_v5 = vpop.eup %4943  ;;  %4955 = vtanh.f32 %v2096_v31 }
 0x225   : > { %v4946_v18 = vpop.eup %4945  ;;  %4957 = vtanh.f32 %v2088_v52 }
 0x226   : > { %v4948_v36 = vpop.eup %4947 }
 0x227   : > { %v4950_v51 = vpop.eup %4949  ;;  %v4285_v47 = vpop.f32.mrb[104].mxu1  ;;  %v2596_v15 = vpack.c.bf16 %v4948_v36, %v4944_v5 }
 0x228   : > { %v2109_v43 = vadd.f32 %v4285_v47, %v5910_v62  ;;  %v2100_v63 = vpop.f32.mrb[105].mxu1  ;;  %v2595_v13 = vpack.c.bf16 %v4950_v51, %v4946_v18 }
 0x229   : > { %v2101_v9 = vadd.f32 %v5910_v62, %v2100_v63  ;;  %v4286_v11 = vpop.f32.mrb[106].mxu1 }
 0x22a   : > { %4959 = vtanh.f32 %v2109_v43  ;;  %v2112_v6 = vadd.f32 %v4286_v11, %v5910_v62  ;;  %v2103_v46 = vpop.f32.mrb[107].mxu1  ;;  %4411 = vmatprep.mubr.msk.bf16.mxu0 %vm1713_vm1, %v2595_v13 }
 0x22b   : > { %4961 = vtanh.f32 %v2101_v9  ;;  %v2104_v7 = vadd.f32 %v5910_v62, %v2103_v46  ;;  %4412 = vmatmul.mubr.msk.bf16.gmra.mrb[96].mxu0 %vm1713_vm1, %v2596_v15 }
 0x22c   : > { %v4952_v26 = vpop.eup %4951  ;;  %4963 = vtanh.f32 %v2112_v6 }
 0x22d   : > { %v4954_v4 = vpop.eup %4953  ;;  %4965 = vtanh.f32 %v2104_v7 }
 0x22e   : > { %v4956_v38 = vpop.eup %4955 }
 0x22f   : > { %v4958_v1 = vpop.eup %4957  ;;  %v4289_v30 = vpop.f32.mrb[108].mxu1  ;;  %v2598_v61 = vpack.c.bf16 %v4956_v38, %v4952_v26 }
 0x230   : > { %v2125_v23 = vadd.f32 %v4289_v30, %v5910_v62  ;;  %v2116_v35 = vpop.f32.mrb[109].mxu1  ;;  %v2597_v58 = vpack.c.bf16 %v4958_v1, %v4954_v4 }
 0x231   : > { %v2117_v42 = vadd.f32 %v5910_v62, %v2116_v35  ;;  %v4290_v48 = vpop.f32.mrb[110].mxu1 }
 0x232   : > { %4967 = vtanh.f32 %v2125_v23  ;;  %v2128_v19 = vadd.f32 %v4290_v48, %v5910_v62  ;;  %v2119_v37 = vpop.f32.mrb[111].mxu1  ;;  %4415 = vmatprep.mubr.msk.bf16.mxu0 %vm1713_vm1, %v2597_v58 }
 0x233   : > { %4969 = vtanh.f32 %v2117_v42  ;;  %v2120_v29 = vadd.f32 %v5910_v62, %v2119_v37  ;;  %4416 = vmatmul.mubr.msk.bf16.gmra.mrb[100].mxu0 %vm1713_vm1, %v2598_v61 }
 0x234   : > { %v4960_v28 = vpop.eup %4959  ;;  %4971 = vtanh.f32 %v2128_v19 }
 0x235   : > { %v4962_v54 = vpop.eup %4961  ;;  %4973 = vtanh.f32 %v2120_v29 }
 0x236   : > { %v4964_v59 = vpop.eup %4963 }
 0x237   : > { %v4966_v0 = vpop.eup %4965  ;;  %v4293_v8 = vpop.f32.mrb[112].mxu1  ;;  %v2600_v27 = vpack.c.bf16 %v4964_v59, %v4960_v28 }
 0x238   : > { %v2141_v34 = vadd.f32 %v4293_v8, %v5910_v62  ;;  %v2132_v41 = vpop.f32.mrb[113].mxu1  ;;  %v2599_v49 = vpack.c.bf16 %v4966_v0, %v4962_v54 }
 0x239   : > { %v2133_v10 = vadd.f32 %v5910_v62, %v2132_v41  ;;  %v4294_v14 = vpop.f32.mrb[114].mxu1 }
 0x23a   : > { %4975 = vtanh.f32 %v2141_v34  ;;  %v2144_v39 = vadd.f32 %v4294_v14, %v5910_v62  ;;  %v2135_v16 = vpop.f32.mrb[115].mxu1  ;;  %4419 = vmatprep.mubr.msk.bf16.mxu0 %vm1713_vm1, %v2599_v49 }
 0x23b   : > { %4977 = vtanh.f32 %v2133_v10  ;;  %v2136_v25 = vadd.f32 %v5910_v62, %v2135_v16  ;;  %4420 = vmatmul.mubr.msk.bf16.gmra.mrb[104].mxu0 %vm1713_vm1, %v2600_v27 }
 0x23c   : > { %v4968_v24 = vpop.eup %4967  ;;  %4979 = vtanh.f32 %v2144_v39 }
 0x23d   : > { %v4970_v2 = vpop.eup %4969  ;;  %4981 = vtanh.f32 %v2136_v25 }
 0x23e   : > { %v4972_v22 = vpop.eup %4971 }
 0x23f   : > { %v4974_v55 = vpop.eup %4973  ;;  %v4297_v32 = vpop.f32.mrb[116].mxu1  ;;  %v2602_v40 = vpack.c.bf16 %v4972_v22, %v4968_v24 }
 0x240   : > { %v2157_v50 = vadd.f32 %v4297_v32, %v5910_v62  ;;  %v2148_v3 = vpop.f32.mrb[117].mxu1  ;;  %v2601_v12 = vpack.c.bf16 %v4974_v55, %v4970_v2 }
 0x241   : > { %v2149_v45 = vadd.f32 %v5910_v62, %v2148_v3  ;;  %v4298_v60 = vpop.f32.mrb[118].mxu1 }
 0x242   : > { %4983 = vtanh.f32 %v2157_v50  ;;  %v2160_v33 = vadd.f32 %v4298_v60, %v5910_v62  ;;  %v2151_v57 = vpop.f32.mrb[119].mxu1  ;;  %4423 = vmatprep.mubr.msk.bf16.mxu0 %vm1713_vm1, %v2601_v12 }
 0x243   : > { %4985 = vtanh.f32 %v2149_v45  ;;  %v2152_v21 = vadd.f32 %v5910_v62, %v2151_v57  ;;  %4424 = vmatmul.mubr.msk.bf16.gmra.mrb[108].mxu0 %vm1713_vm1, %v2602_v40 }
 0x244   : > { %v4976_v56 = vpop.eup %4975  ;;  %4987 = vtanh.f32 %v2160_v33 }
 0x245   : > { %v4978_v53 = vpop.eup %4977  ;;  %4989 = vtanh.f32 %v2152_v21 }
 0x246   : > { %v4980_v17 = vpop.eup %4979 }
 0x247   : > { %v4982_v20 = vpop.eup %4981  ;;  %v4301_v31 = vpop.f32.mrb[120].mxu1  ;;  %v2604_v44 = vpack.c.bf16 %v4980_v17, %v4976_v56 }
 0x248   : > { %v2173_v52 = vadd.f32 %v4301_v31, %v5910_v62  ;;  %v2164_v5 = vpop.f32.mrb[121].mxu1  ;;  %v2603_v18 = vpack.c.bf16 %v4982_v20, %v4978_v53 }
 0x249   : > { %v2165_v36 = vadd.f32 %v5910_v62, %v2164_v5  ;;  %v4302_v51 = vpop.f32.mrb[122].mxu1 }
 0x24a   : > { %4991 = vtanh.f32 %v2173_v52  ;;  %v2176_v47 = vadd.f32 %v4302_v51, %v5910_v62  ;;  %v2167_v15 = vpop.f32.mrb[123].mxu1  ;;  %4427 = vmatprep.mubr.msk.bf16.mxu0 %vm1713_vm1, %v2603_v18 }
 0x24b   : > { %4993 = vtanh.f32 %v2165_v36  ;;  %v2168_v43 = vadd.f32 %v5910_v62, %v2167_v15  ;;  %4428 = vmatmul.mubr.msk.bf16.gmra.mrb[112].mxu0 %vm1713_vm1, %v2604_v44 }
 0x24c   : > { %v4984_v63 = vpop.eup %4983  ;;  %4995 = vtanh.f32 %v2176_v47 }
 0x24d   : > { %v4986_v13 = vpop.eup %4985  ;;  %4997 = vtanh.f32 %v2168_v43 }
 0x24e   : > { %v4988_v9 = vpop.eup %4987 }
 0x24f   : > { %v4990_v11 = vpop.eup %4989  ;;  %v4305_v6 = vpop.f32.mrb[124].mxu1  ;;  %v2606_v46 = vpack.c.bf16 %v4988_v9, %v4984_v63 }
 0x250   : > { %v2189_v7 = vadd.f32 %v4305_v6, %v5910_v62  ;;  %v2180_v26 = vpop.f32.mrb[125].mxu1  ;;  %v2605_v4 = vpack.c.bf16 %v4990_v11, %v4986_v13 }
 0x251   : > { %v2181_v38 = vadd.f32 %v5910_v62, %v2180_v26  ;;  %v4306_v1 = vpop.f32.mrb[126].mxu1 }
 0x252   : > { %4999 = vtanh.f32 %v2189_v7  ;;  %v2192_v30 = vadd.f32 %v4306_v1, %v5910_v62  ;;  %v2183_v61 = vpop.f32.mrb[127].mxu1  ;;  %4431 = vmatprep.mubr.msk.bf16.mxu0 %vm1713_vm1, %v2605_v4 }
 0x253   : > { %5001 = vtanh.f32 %v2181_v38  ;;  %v2184_v23 = vadd.f32 %v5910_v62, %v2183_v61  ;;  %4432 = vmatmul.mubr.msk.bf16.gmra.mrb[116].mxu0 %vm1713_vm1, %v2606_v46 }
 0x254   : > { %v4992_v35 = vpop.eup %4991  ;;  %5003 = vtanh.f32 %v2192_v30 }
 0x255   : > { %v4994_v58 = vpop.eup %4993  ;;  %5005 = vtanh.f32 %v2184_v23 }
 0x256   : > { %v4996_v42 = vpop.eup %4995 }
 0x257   : > { %v4998_v48 = vpop.eup %4997  ;;  %v4309_v19 = vpop.f32.mrb[128].mxu1  ;;  %v2608_v37 = vpack.c.bf16 %v4996_v42, %v4992_v35 }
 0x258   : > { %v2205_v29 = vadd.f32 %v4309_v19, %v5910_v62  ;;  %v2196_v28 = vpop.f32.mrb[129].mxu1  ;;  %v2607_v54 = vpack.c.bf16 %v4998_v48, %v4994_v58 }
 0x259   : > { %v2197_v59 = vadd.f32 %v5910_v62, %v2196_v28  ;;  %v4310_v0 = vpop.f32.mrb[130].mxu1 }
 0x25a   : > { %5007 = vtanh.f32 %v2205_v29  ;;  %v2208_v8 = vadd.f32 %v4310_v0, %v5910_v62  ;;  %v2199_v27 = vpop.f32.mrb[131].mxu1  ;;  %4435 = vmatprep.mubr.msk.bf16.mxu0 %vm1713_vm1, %v2607_v54 }
 0x25b   : > { %5009 = vtanh.f32 %v2197_v59  ;;  %v2200_v34 = vadd.f32 %v5910_v62, %v2199_v27  ;;  %4436 = vmatmul.mubr.msk.bf16.gmra.mrb[120].mxu0 %vm1713_vm1, %v2608_v37 }
 0x25c   : > { %v5000_v41 = vpop.eup %4999  ;;  %5011 = vtanh.f32 %v2208_v8 }
 0x25d   : > { %v5002_v49 = vpop.eup %5001  ;;  %5013 = vtanh.f32 %v2200_v34 }
 0x25e   : > { %v5004_v10 = vpop.eup %5003 }
 0x25f   : > { %v5006_v14 = vpop.eup %5005  ;;  %v4313_v39 = vpop.f32.mrb[132].mxu1  ;;  %v2610_v16 = vpack.c.bf16 %v5004_v10, %v5000_v41 }
 0x260   : > { %v2221_v25 = vadd.f32 %v4313_v39, %v5910_v62  ;;  %v2212_v24 = vpop.f32.mrb[133].mxu1  ;;  %v2609_v2 = vpack.c.bf16 %v5006_v14, %v5002_v49 }
 0x261   : > { %v2213_v22 = vadd.f32 %v5910_v62, %v2212_v24  ;;  %v4314_v55 = vpop.f32.mrb[134].mxu1 }
 0x262   : > { %5015 = vtanh.f32 %v2221_v25  ;;  %v2224_v32 = vadd.f32 %v4314_v55, %v5910_v62  ;;  %v2215_v40 = vpop.f32.mrb[135].mxu1  ;;  %4439 = vmatprep.mubr.msk.bf16.mxu0 %vm1713_vm1, %v2609_v2 }
 0x263   : > { %5017 = vtanh.f32 %v2213_v22  ;;  %v2216_v50 = vadd.f32 %v5910_v62, %v2215_v40  ;;  %4440 = vmatmul.mubr.msk.bf16.gmra.mrb[124].mxu0 %vm1713_vm1, %v2610_v16 }
 0x264   : > { %v5008_v3 = vpop.eup %5007  ;;  %5019 = vtanh.f32 %v2224_v32 }
 0x265   : > { %v5010_v12 = vpop.eup %5009  ;;  %5021 = vtanh.f32 %v2216_v50 }
 0x266   : > { %v5012_v45 = vpop.eup %5011 }
 0x267   : > { %v5014_v60 = vpop.eup %5013  ;;  %v4317_v33 = vpop.f32.mrb[136].mxu1  ;;  %v2612_v57 = vpack.c.bf16 %v5012_v45, %v5008_v3 }
 0x268   : > { %v2237_v21 = vadd.f32 %v4317_v33, %v5910_v62  ;;  %v2228_v56 = vpop.f32.mrb[137].mxu1  ;;  %v2611_v53 = vpack.c.bf16 %v5014_v60, %v5010_v12 }
 0x269   : > { %v2229_v17 = vadd.f32 %v5910_v62, %v2228_v56  ;;  %v4318_v20 = vpop.f32.mrb[138].mxu1 }
 0x26a   : > { %5023 = vtanh.f32 %v2237_v21  ;;  %v2240_v31 = vadd.f32 %v4318_v20, %v5910_v62  ;;  %v2231_v44 = vpop.f32.mrb[139].mxu1  ;;  %4443 = vmatprep.mubr.msk.bf16.mxu0 %vm1713_vm1, %v2611_v53 }
 0x26b   : > { %5025 = vtanh.f32 %v2229_v17  ;;  %v2232_v52 = vadd.f32 %v5910_v62, %v2231_v44  ;;  %4444 = vmatmul.mubr.msk.bf16.gmra.mrb[128].mxu0 %vm1713_vm1, %v2612_v57 }
 0x26c   : > { %v5016_v5 = vpop.eup %5015  ;;  %5027 = vtanh.f32 %v2240_v31 }
 0x26d   : > { %v5018_v18 = vpop.eup %5017  ;;  %5029 = vtanh.f32 %v2232_v52 }
 0x26e   : > { %v5020_v36 = vpop.eup %5019 }
 0x26f   : > { %v5022_v51 = vpop.eup %5021  ;;  %v4321_v47 = vpop.f32.mrb[140].mxu1  ;;  %v2614_v15 = vpack.c.bf16 %v5020_v36, %v5016_v5 }
 0x270   : > { %v2253_v43 = vadd.f32 %v4321_v47, %v5910_v62  ;;  %v2244_v63 = vpop.f32.mrb[141].mxu1  ;;  %v2613_v13 = vpack.c.bf16 %v5022_v51, %v5018_v18 }
 0x271   : > { %v2245_v9 = vadd.f32 %v5910_v62, %v2244_v63  ;;  %v4322_v11 = vpop.f32.mrb[142].mxu1 }
 0x272   : > { %5031 = vtanh.f32 %v2253_v43  ;;  %v2256_v6 = vadd.f32 %v4322_v11, %v5910_v62  ;;  %v2247_v46 = vpop.f32.mrb[143].mxu1  ;;  %4447 = vmatprep.mubr.msk.bf16.mxu0 %vm1713_vm1, %v2613_v13 }
 0x273   : > { %5033 = vtanh.f32 %v2245_v9  ;;  %v2248_v7 = vadd.f32 %v5910_v62, %v2247_v46  ;;  %4448 = vmatmul.mubr.msk.bf16.gmra.mrb[132].mxu0 %vm1713_vm1, %v2614_v15 }
 0x274   : > { %v5024_v26 = vpop.eup %5023  ;;  %5035 = vtanh.f32 %v2256_v6 }
 0x275   : > { %v5026_v4 = vpop.eup %5025  ;;  %5037 = vtanh.f32 %v2248_v7 }
 0x276   : > { %v5028_v38 = vpop.eup %5027 }
 0x277   : > { %v5030_v1 = vpop.eup %5029  ;;  %v4325_v30 = vpop.f32.mrb[144].mxu1  ;;  %v2616_v61 = vpack.c.bf16 %v5028_v38, %v5024_v26 }
 0x278   : > { %v2269_v23 = vadd.f32 %v4325_v30, %v5910_v62  ;;  %v2260_v35 = vpop.f32.mrb[145].mxu1  ;;  %v2615_v58 = vpack.c.bf16 %v5030_v1, %v5026_v4 }
 0x279   : > { %v2261_v42 = vadd.f32 %v5910_v62, %v2260_v35  ;;  %v4326_v48 = vpop.f32.mrb[146].mxu1 }
 0x27a   : > { %5039 = vtanh.f32 %v2269_v23  ;;  %v2272_v19 = vadd.f32 %v4326_v48, %v5910_v62  ;;  %v2263_v37 = vpop.f32.mrb[147].mxu1  ;;  %4451 = vmatprep.mubr.msk.bf16.mxu0 %vm1713_vm1, %v2615_v58 }
 0x27b   : > { %5041 = vtanh.f32 %v2261_v42  ;;  %v2264_v29 = vadd.f32 %v5910_v62, %v2263_v37  ;;  %4452 = vmatmul.mubr.msk.bf16.gmra.mrb[136].mxu0 %vm1713_vm1, %v2616_v61 }
 0x27c   : > { %v5032_v28 = vpop.eup %5031  ;;  %5043 = vtanh.f32 %v2272_v19 }
 0x27d   : > { %v5034_v54 = vpop.eup %5033  ;;  %5045 = vtanh.f32 %v2264_v29 }
 0x27e   : > { %v5036_v59 = vpop.eup %5035 }
 0x27f   : > { %v5038_v0 = vpop.eup %5037  ;;  %v4329_v8 = vpop.f32.mrb[148].mxu1  ;;  %v2618_v27 = vpack.c.bf16 %v5036_v59, %v5032_v28 }
 0x280   : > { %v2285_v34 = vadd.f32 %v4329_v8, %v5910_v62  ;;  %v2276_v41 = vpop.f32.mrb[149].mxu1  ;;  %v2617_v49 = vpack.c.bf16 %v5038_v0, %v5034_v54 }
 0x281   : > { %v2277_v10 = vadd.f32 %v5910_v62, %v2276_v41  ;;  %v4330_v14 = vpop.f32.mrb[150].mxu1 }
 0x282   : > { %5047 = vtanh.f32 %v2285_v34  ;;  %v2288_v39 = vadd.f32 %v4330_v14, %v5910_v62  ;;  %v2279_v16 = vpop.f32.mrb[151].mxu1  ;;  %4455 = vmatprep.mubr.msk.bf16.mxu0 %vm1713_vm1, %v2617_v49 }
 0x283   : > { %5049 = vtanh.f32 %v2277_v10  ;;  %v2280_v25 = vadd.f32 %v5910_v62, %v2279_v16  ;;  %4456 = vmatmul.mubr.msk.bf16.gmra.mrb[140].mxu0 %vm1713_vm1, %v2618_v27 }
 0x284   : > { %v5040_v24 = vpop.eup %5039  ;;  %5051 = vtanh.f32 %v2288_v39 }
 0x285   : > { %v5042_v2 = vpop.eup %5041  ;;  %5053 = vtanh.f32 %v2280_v25  ;;  %v6103_v25 = vld [vmem:[%s6467_s4] ss:$0 sm:$0xff] }
 0x286   : > { %v5044_v22 = vpop.eup %5043 }
 0x287   : > { %v5046_v55 = vpop.eup %5045  ;;  %v4333_v32 = vpop.f32.mrb[152].mxu1  ;;  %v2620_v40 = vpack.c.bf16 %v5044_v22, %v5040_v24 }
 0x288   : > { %v2301_v50 = vadd.f32 %v4333_v32, %v5910_v62  ;;  %v2292_v3 = vpop.f32.mrb[153].mxu1  ;;  %v2619_v12 = vpack.c.bf16 %v5046_v55, %v5042_v2 }
 0x289   : > { %v2293_v45 = vadd.f32 %v5910_v62, %v2292_v3  ;;  %v4334_v60 = vpop.f32.mrb[154].mxu1 }
 0x28a   : > { %5055 = vtanh.f32 %v2301_v50  ;;  %v2304_v33 = vadd.f32 %v4334_v60, %v5910_v62  ;;  %v2295_v57 = vpop.f32.mrb[155].mxu1  ;;  %4459 = vmatprep.mubr.msk.bf16.mxu0 %vm1713_vm1, %v2619_v12 }
 0x28b   : > { %5057 = vtanh.f32 %v2293_v45  ;;  %v2296_v21 = vadd.f32 %v5910_v62, %v2295_v57  ;;  %4460 = vmatmul.mubr.msk.bf16.gmra.mrb[144].mxu0 %vm1713_vm1, %v2620_v40 }
 0x28c   : > { %v5048_v56 = vpop.eup %5047  ;;  %5059 = vtanh.f32 %v2304_v33 }
 0x28d   : > { %v5050_v53 = vpop.eup %5049  ;;  %5061 = vtanh.f32 %v2296_v21 }
 0x28e   : > { %v5052_v17 = vpop.eup %5051 }
 0x28f   : > { %v5054_v20 = vpop.eup %5053  ;;  %v4337_v31 = vpop.f32.mrb[156].mxu1  ;;  %v2622_v44 = vpack.c.bf16 %v5052_v17, %v5048_v56 }
 0x290   : > { %v2317_v52 = vadd.f32 %v4337_v31, %v5910_v62  ;;  %v2308_v5 = vpop.f32.mrb[157].mxu1  ;;  %v2621_v18 = vpack.c.bf16 %v5054_v20, %v5050_v53 }
 0x291   : > { %v2309_v36 = vadd.f32 %v5910_v62, %v2308_v5  ;;  %v4338_v51 = vpop.f32.mrb[158].mxu1 }
 0x292   : > { %5063 = vtanh.f32 %v2317_v52  ;;  %v2320_v47 = vadd.f32 %v4338_v51, %v5910_v62  ;;  %v2311_v15 = vpop.f32.mrb[159].mxu1  ;;  %4463 = vmatprep.mubr.msk.bf16.mxu0 %vm1713_vm1, %v2621_v18 }
 0x293   : > { %5065 = vtanh.f32 %v2309_v36  ;;  %v2312_v43 = vadd.f32 %v5910_v62, %v2311_v15  ;;  %4464 = vmatmul.mubr.msk.bf16.gmra.mrb[148].mxu0 %vm1713_vm1, %v2622_v44 }
 0x294   : > { %v5056_v63 = vpop.eup %5055  ;;  %5067 = vtanh.f32 %v2320_v47 }
 0x295   : > { %v5058_v13 = vpop.eup %5057  ;;  %5069 = vtanh.f32 %v2312_v43 }
 0x296   : > { %v5060_v9 = vpop.eup %5059 }
 0x297   : > { %v5062_v11 = vpop.eup %5061  ;;  %v4341_v6 = vpop.f32.mrb[160].mxu1  ;;  %v2624_v46 = vpack.c.bf16 %v5060_v9, %v5056_v63 }
 0x298   : > { %v2333_v7 = vadd.f32 %v4341_v6, %v5910_v62  ;;  %v2324_v26 = vpop.f32.mrb[161].mxu1  ;;  %v2623_v4 = vpack.c.bf16 %v5062_v11, %v5058_v13 }
 0x299   : > { %v2325_v38 = vadd.f32 %v5910_v62, %v2324_v26  ;;  %v4342_v1 = vpop.f32.mrb[162].mxu1 }
 0x29a   : > { %5071 = vtanh.f32 %v2333_v7  ;;  %v2336_v30 = vadd.f32 %v4342_v1, %v5910_v62  ;;  %v2327_v61 = vpop.f32.mrb[163].mxu1  ;;  %4467 = vmatprep.mubr.msk.bf16.mxu0 %vm1713_vm1, %v2623_v4  ;;  %v6129_v4 = vld [vmem:[%s6469_s6] ss:$0 sm:$0xff] }
 0x29b   : > { %5073 = vtanh.f32 %v2325_v38  ;;  %v2328_v23 = vadd.f32 %v5910_v62, %v2327_v61  ;;  %4468 = vmatmul.mubr.msk.bf16.gmra.mrb[152].mxu0 %vm1713_vm1, %v2624_v46 }
 0x29c   : > { %v5064_v35 = vpop.eup %5063  ;;  %5075 = vtanh.f32 %v2336_v30 }
 0x29d   : > { %v5066_v58 = vpop.eup %5065  ;;  %5077 = vtanh.f32 %v2328_v23 }
 0x29e   : > { %v5068_v42 = vpop.eup %5067 }
 0x29f   : > { %v5070_v48 = vpop.eup %5069  ;;  %v4345_v19 = vpop.f32.mrb[164].mxu1  ;;  %v2626_v37 = vpack.c.bf16 %v5068_v42, %v5064_v35 }
 0x2a0   : > { %v2349_v29 = vadd.f32 %v4345_v19, %v5910_v62  ;;  %v2340_v28 = vpop.f32.mrb[165].mxu1  ;;  %v2625_v54 = vpack.c.bf16 %v5070_v48, %v5066_v58 }
 0x2a1   : > { %v2341_v59 = vadd.f32 %v5910_v62, %v2340_v28  ;;  %v4346_v0 = vpop.f32.mrb[166].mxu1 }
 0x2a2   : > { %5079 = vtanh.f32 %v2349_v29  ;;  %v2352_v8 = vadd.f32 %v4346_v0, %v5910_v62  ;;  %v2343_v27 = vpop.f32.mrb[167].mxu1  ;;  %4471 = vmatprep.mubr.msk.bf16.mxu0 %vm1713_vm1, %v2625_v54 }
 0x2a3   : > { %5081 = vtanh.f32 %v2341_v59  ;;  %v2344_v34 = vadd.f32 %v5910_v62, %v2343_v27  ;;  %4472 = vmatmul.mubr.msk.bf16.gmra.mrb[156].mxu0 %vm1713_vm1, %v2626_v37 }
 0x2a4   : > { %v5072_v41 = vpop.eup %5071  ;;  %5083 = vtanh.f32 %v2352_v8 }
 0x2a5   : > { %v5074_v49 = vpop.eup %5073  ;;  %5085 = vtanh.f32 %v2344_v34 }
 0x2a6   : > { %v5076_v10 = vpop.eup %5075 }
 0x2a7   : > { %v5078_v14 = vpop.eup %5077  ;;  %v4349_v39 = vpop.f32.mrb[168].mxu1  ;;  %v2628_v16 = vpack.c.bf16 %v5076_v10, %v5072_v41 }
 0x2a8   : > { %v2365_v24 = vadd.f32 %v6103_v25, %v4349_v39  ;;  %v2356_v2 = vpop.f32.mrb[169].mxu1  ;;  %v2627_v22 = vpack.c.bf16 %v5078_v14, %v5074_v49 }
 0x2a9   : > { %v2357_v62 = vadd.f32 %v6103_v25, %v2356_v2  ;;  %v4350_v55 = vpop.f32.mrb[170].mxu1 }
 0x2aa   : > { %5087 = vtanh.f32 %v2365_v24  ;;  %v2368_v32 = vadd.f32 %v6103_v25, %v4350_v55  ;;  %v2359_v40 = vpop.f32.mrb[171].mxu1  ;;  %4475 = vmatprep.mubr.msk.bf16.mxu0 %vm1713_vm1, %v2627_v22 }
 0x2ab   : > { %5089 = vtanh.f32 %v2357_v62  ;;  %v2360_v50 = vadd.f32 %v6103_v25, %v2359_v40  ;;  %4476 = vmatmul.mubr.msk.bf16.gmra.mrb[160].mxu0 %vm1713_vm1, %v2628_v16 }
 0x2ac   : > { %v5080_v3 = vpop.eup %5079  ;;  %5091 = vtanh.f32 %v2368_v32 }
 0x2ad   : > { %v5082_v12 = vpop.eup %5081  ;;  %5093 = vtanh.f32 %v2360_v50 }
 0x2ae   : > { %v5084_v45 = vpop.eup %5083 }
 0x2af   : > { %v5086_v60 = vpop.eup %5085  ;;  %v4353_v33 = vpop.f32.mrb[172].mxu1  ;;  %v2630_v57 = vpack.c.bf16 %v5084_v45, %v5080_v3 }
 0x2b0   : > { %v2381_v21 = vadd.f32 %v6103_v25, %v4353_v33  ;;  %v2372_v56 = vpop.f32.mrb[173].mxu1  ;;  %v2629_v53 = vpack.c.bf16 %v5086_v60, %v5082_v12 }
 0x2b1   : > { %v2373_v17 = vadd.f32 %v6103_v25, %v2372_v56  ;;  %v4354_v20 = vpop.f32.mrb[174].mxu1 }
 0x2b2   : > { %5095 = vtanh.f32 %v2381_v21  ;;  %v2384_v31 = vadd.f32 %v6103_v25, %v4354_v20  ;;  %v2375_v44 = vpop.f32.mrb[175].mxu1  ;;  %4479 = vmatprep.mubr.msk.bf16.mxu0 %vm1713_vm1, %v2629_v53 }
 0x2b3   : > { %5097 = vtanh.f32 %v2373_v17  ;;  %v2376_v52 = vadd.f32 %v6103_v25, %v2375_v44  ;;  %4480 = vmatmul.mubr.msk.bf16.gmra.mrb[164].mxu0 %vm1713_vm1, %v2630_v57 }
 0x2b4   : > { %v5088_v5 = vpop.eup %5087  ;;  %5099 = vtanh.f32 %v2384_v31 }
 0x2b5   : > { %v5090_v18 = vpop.eup %5089  ;;  %5101 = vtanh.f32 %v2376_v52 }
 0x2b6   : > { %v5092_v36 = vpop.eup %5091 }
 0x2b7   : > { %v5094_v51 = vpop.eup %5093  ;;  %v4357_v47 = vpop.f32.mrb[176].mxu1  ;;  %v2632_v15 = vpack.c.bf16 %v5092_v36, %v5088_v5 }
 0x2b8   : > { %v2397_v43 = vadd.f32 %v6103_v25, %v4357_v47  ;;  %v2388_v63 = vpop.f32.mrb[177].mxu1  ;;  %v2631_v13 = vpack.c.bf16 %v5094_v51, %v5090_v18 }
 0x2b9   : > { %v2389_v9 = vadd.f32 %v6103_v25, %v2388_v63  ;;  %v4358_v11 = vpop.f32.mrb[178].mxu1 }
 0x2ba   : > { %5103 = vtanh.f32 %v2397_v43  ;;  %v2400_v6 = vadd.f32 %v6103_v25, %v4358_v11  ;;  %v2391_v46 = vpop.f32.mrb[179].mxu1  ;;  %4483 = vmatprep.mubr.msk.bf16.mxu0 %vm1713_vm1, %v2631_v13 }
 0x2bb   : > { %5105 = vtanh.f32 %v2389_v9  ;;  %v2392_v7 = vadd.f32 %v6103_v25, %v2391_v46  ;;  %4484 = vmatmul.mubr.msk.bf16.gmra.mrb[168].mxu0 %vm1713_vm1, %v2632_v15 }
 0x2bc   : > { %v5096_v26 = vpop.eup %5095  ;;  %5107 = vtanh.f32 %v2400_v6 }
 0x2bd   : > { %v5098_v38 = vpop.eup %5097  ;;  %5109 = vtanh.f32 %v2392_v7 }
 0x2be   : > { %v5100_v1 = vpop.eup %5099  ;;  %v4381_v30 = vpop.f32.mrb[64].mxu0 }
 0x2bf   : > { %v5102_v61 = vpop.eup %5101  ;;  %v2917_v23 = vadd.f32 %v4381_v30, %v6129_v4  ;;  %v4361_v35 = vpop.f32.mrb[180].mxu1  ;;  %v2634_v42 = vpack.c.bf16 %v5100_v1, %v5096_v26 }
 0x2c0   : > { %v2908_v58 = vpop.f32.mrb[65].mxu0  ;;  %v2413_v48 = vadd.f32 %v6103_v25, %v4361_v35  ;;  %v2404_v37 = vpop.f32.mrb[181].mxu1  ;;  %v2633_v28 = vpack.c.bf16 %v5102_v61, %v5098_v38 }
 0x2c1   : > { %v2909_v19 = vadd.f32 %v6129_v4, %v2908_v58  ;;  %v4382_v29 = vpop.f32.mrb[66].mxu0  ;;  %3421 = vst [vmem:[%s6134_s20 + $0x10] sm:$0xff] %v2917_v23  ;;  %v2405_v54 = vadd.f32 %v6103_v25, %v2404_v37  ;;  %v4362_v0 = vpop.f32.mrb[182].mxu1 }
 0x2c2   : > { %v2920_v59 = vadd.f32 %v4382_v29, %v6129_v4  ;;  %v2911_v8 = vpop.f32.mrb[67].mxu0  ;;  %5111 = vtanh.f32 %v2413_v48  ;;  %v2416_v27 = vadd.f32 %v6103_v25, %v4362_v0  ;;  %v2407_v41 = vpop.f32.mrb[183].mxu1  ;;  %4487 = vmatprep.mubr.msk.bf16.mxu0 %vm1713_vm1, %v2633_v28 }
 0x2c3   : > { %3419 = vst [vmem:[%s6134_s20] sm:$0xff] %v2909_v19  ;;  %v2912_v34 = vadd.f32 %v6129_v4, %v2911_v8  ;;  %5113 = vtanh.f32 %v2405_v54  ;;  %v2408_v49 = vadd.f32 %v6103_v25, %v2407_v41  ;;  %4488 = vmatmul.mubr.msk.bf16.gmra.mrb[172].mxu0 %vm1713_vm1, %v2634_v42 }
 0x2c4   : > { %3422 = vst [vmem:[%s6134_s20 + $0x18] sm:$0xff] %v2920_v59  ;;  %v5104_v10 = vpop.eup %5103  ;;  %5115 = vtanh.f32 %v2416_v27 }
 0x2c5   : > { %3420 = vst [vmem:[%s6134_s20 + $0x8] sm:$0xff] %v2912_v34  ;;  %v5106_v14 = vpop.eup %5105  ;;  %5117 = vtanh.f32 %v2408_v49 }
 0x2c6   : > { %v5108_v39 = vpop.eup %5107  ;;  %v4385_v16 = vpop.f32.mrb[68].mxu0 }
 0x2c7   : > { %v5110_v24 = vpop.eup %5109  ;;  %v2933_v2 = vadd.f32 %v4385_v16, %v6129_v4  ;;  %v4365_v22 = vpop.f32.mrb[184].mxu1  ;;  %v2636_v55 = vpack.c.bf16 %v5108_v39, %v5104_v10 }
 0x2c8   : > { %v2924_v62 = vpop.f32.mrb[69].mxu0  ;;  %v2429_v32 = vadd.f32 %v6103_v25, %v4365_v22  ;;  %v2420_v50 = vpop.f32.mrb[185].mxu1  ;;  %v2635_v12 = vpack.c.bf16 %v5110_v24, %v5106_v14 }
 0x2c9   : > { %v2925_v40 = vadd.f32 %v6129_v4, %v2924_v62  ;;  %v4386_v3 = vpop.f32.mrb[70].mxu0  ;;  %3425 = vst [vmem:[%s6134_s20 + $0x30] sm:$0xff] %v2933_v2  ;;  %v2421_v45 = vadd.f32 %v6103_v25, %v2420_v50  ;;  %v4366_v33 = vpop.f32.mrb[186].mxu1 }
 0x2ca   : > { %v2936_v60 = vadd.f32 %v4386_v3, %v6129_v4  ;;  %v2927_v57 = vpop.f32.mrb[71].mxu0  ;;  %5119 = vtanh.f32 %v2429_v32  ;;  %v2432_v21 = vadd.f32 %v6103_v25, %v4366_v33  ;;  %v2423_v53 = vpop.f32.mrb[187].mxu1  ;;  %4491 = vmatprep.mubr.msk.bf16.mxu0 %vm1713_vm1, %v2635_v12 }
 0x2cb   : > { %3423 = vst [vmem:[%s6134_s20 + $0x20] sm:$0xff] %v2925_v40  ;;  %v2928_v56 = vadd.f32 %v6129_v4, %v2927_v57  ;;  %5121 = vtanh.f32 %v2421_v45  ;;  %v2424_v17 = vadd.f32 %v6103_v25, %v2423_v53  ;;  %4492 = vmatmul.mubr.msk.bf16.gmra.mrb[176].mxu0 %vm1713_vm1, %v2636_v55 }
 0x2cc   : > { %3426 = vst [vmem:[%s6134_s20 + $0x38] sm:$0xff] %v2936_v60  ;;  %v5112_v20 = vpop.eup %5111  ;;  %5123 = vtanh.f32 %v2432_v21 }
 0x2cd   : > { %3424 = vst [vmem:[%s6134_s20 + $0x28] sm:$0xff] %v2928_v56  ;;  %v5114_v31 = vpop.eup %5113  ;;  %5125 = vtanh.f32 %v2424_v17 }
 0x2ce   : > { %v5116_v44 = vpop.eup %5115  ;;  %v4389_v52 = vpop.f32.mrb[72].mxu0 }
 0x2cf   : > { %v5118_v5 = vpop.eup %5117  ;;  %v2949_v18 = vadd.f32 %v4389_v52, %v6129_v4  ;;  %v4369_v36 = vpop.f32.mrb[188].mxu1  ;;  %v2638_v47 = vpack.c.bf16 %v5116_v44, %v5112_v20 }
 0x2d0   : > { %v2940_v51 = vpop.f32.mrb[73].mxu0  ;;  %v2445_v15 = vadd.f32 %v6103_v25, %v4369_v36  ;;  %v2436_v63 = vpop.f32.mrb[189].mxu1  ;;  %v2637_v9 = vpack.c.bf16 %v5118_v5, %v5114_v31 }
 0x2d1   : > { %v2941_v43 = vadd.f32 %v6129_v4, %v2940_v51  ;;  %v4390_v13 = vpop.f32.mrb[74].mxu0  ;;  %3429 = vst [vmem:[%s6134_s20 + $0x50] sm:$0xff] %v2949_v18  ;;  %v2437_v11 = vadd.f32 %v6103_v25, %v2436_v63  ;;  %v4370_v46 = vpop.f32.mrb[190].mxu1 }
 0x2d2   : > { %v2952_v6 = vadd.f32 %v4390_v13, %v6129_v4  ;;  %v2943_v7 = vpop.f32.mrb[75].mxu0  ;;  %5127 = vtanh.f32 %v2445_v15  ;;  %v2448_v26 = vadd.f32 %v6103_v25, %v4370_v46  ;;  %v2439_v1 = vpop.f32.mrb[191].mxu1  ;;  %4495 = vmatprep.mubr.msk.bf16.mxu0 %vm1713_vm1, %v2637_v9 }
 0x2d3   : > { %3427 = vst [vmem:[%s6134_s20 + $0x40] sm:$0xff] %v2941_v43  ;;  %v2944_v38 = vadd.f32 %v6129_v4, %v2943_v7  ;;  %5129 = vtanh.f32 %v2437_v11  ;;  %v2440_v30 = vadd.f32 %v6103_v25, %v2439_v1  ;;  %4496 = vmatmul.mubr.msk.bf16.gmra.mrb[180].mxu0 %vm1713_vm1, %v2638_v47 }
 0x2d4   : > { %3430 = vst [vmem:[%s6134_s20 + $0x58] sm:$0xff] %v2952_v6  ;;  %v5120_v61 = vpop.eup %5119  ;;  %5131 = vtanh.f32 %v2448_v26 }
 0x2d5   : > { %3428 = vst [vmem:[%s6134_s20 + $0x48] sm:$0xff] %v2944_v38  ;;  %v5122_v23 = vpop.eup %5121  ;;  %5133 = vtanh.f32 %v2440_v30 }
 0x2d6   : > { %v5124_v35 = vpop.eup %5123  ;;  %v4393_v58 = vpop.f32.mrb[76].mxu0 }
 0x2d7   : > { %v5126_v42 = vpop.eup %5125  ;;  %v2965_v48 = vadd.f32 %v4393_v58, %v6129_v4  ;;  %v2956_v19 = vpop.f32.mrb[77].mxu0  ;;  %v2640_v37 = vpack.c.bf16 %v5124_v35, %v5120_v61 }
 0x2d8   : > { %v2957_v25 = vadd.f32 %v6129_v4, %v2956_v19  ;;  %v4394_v29 = vpop.f32.mrb[78].mxu0  ;;  %v2639_v28 = vpack.c.bf16 %v5126_v42, %v5122_v23 }
 0x2d9   : > { %3433 = vst [vmem:[%s6134_s20 + $0x70] sm:$0xff] %v2965_v48  ;;  %v2968_v54 = vadd.f32 %v4394_v29, %v6129_v4  ;;  %v2959_v59 = vpop.f32.mrb[79].mxu0 }
 0x2da   : > { %3431 = vst [vmem:[%s6134_s20 + $0x60] sm:$0xff] %v2957_v25  ;;  %v2960_v0 = vadd.f32 %v6129_v4, %v2959_v59  ;;  %4499 = vmatprep.mubr.msk.bf16.mxu0 %vm1713_vm1, %v2639_v28 }
 0x2db   : > { %3434 = vst [vmem:[%s6134_s20 + $0x78] sm:$0xff] %v2968_v54  ;;  %4500 = vmatmul.mubr.msk.bf16.gmra.mrb[184].mxu0 %vm1713_vm1, %v2640_v37 }
 0x2dc   : > { %v5128_v8 = vpop.eup %5127  ;;  %3432 = vst [vmem:[%s6134_s20 + $0x68] sm:$0xff] %v2960_v0 }
 0x2dd   : > { %v5130_v27 = vpop.eup %5129 }
 0x2de   : > { %v5132_v34 = vpop.eup %5131  ;;  %v4397_v41 = vpop.f32.mrb[80].mxu0 }
 0x2df   : > { %v5134_v49 = vpop.eup %5133  ;;  %v2981_v10 = vadd.f32 %v4397_v41, %v6129_v4  ;;  %v2972_v14 = vpop.f32.mrb[81].mxu0  ;;  %v2642_v39 = vpack.c.bf16 %v5132_v34, %v5128_v8 }
 0x2e0   : > { %v2973_v16 = vadd.f32 %v6129_v4, %v2972_v14  ;;  %v4398_v24 = vpop.f32.mrb[82].mxu0  ;;  %v2641_v2 = vpack.c.bf16 %v5134_v49, %v5130_v27 }
 0x2e1   : > { %3437 = vst [vmem:[%s6134_s20 + $0x90] sm:$0xff] %v2981_v10  ;;  %v2984_v22 = vadd.f32 %v4398_v24, %v6129_v4  ;;  %v2975_v62 = vpop.f32.mrb[83].mxu0 }
 0x2e2   : > { %3435 = vst [vmem:[%s6134_s20 + $0x80] sm:$0xff] %v2973_v16  ;;  %v2976_v55 = vadd.f32 %v6129_v4, %v2975_v62  ;;  %4503 = vmatprep.mubr.msk.bf16.mxu0 %vm1713_vm1, %v2641_v2 }
 0x2e3   : > { %3438 = vst [vmem:[%s6134_s20 + $0x98] sm:$0xff] %v2984_v22  ;;  %4504 = vmatmul.mubr.msk.bf16.gmra.mrb[188].mxu0 %vm1713_vm1, %v2642_v39 }
 0x2e4   : > { %3436 = vst [vmem:[%s6134_s20 + $0x88] sm:$0xff] %v2976_v55 }
 0x2e6   : > { %v4401_v32 = vpop.f32.mrb[84].mxu0 }
 0x2e7   : > { %v2997_v40 = vadd.f32 %v4401_v32, %v6129_v4  ;;  %v2988_v50 = vpop.f32.mrb[85].mxu0 }
 0x2e8   : > { %v2989_v3 = vadd.f32 %v6129_v4, %v2988_v50  ;;  %v4402_v12 = vpop.f32.mrb[86].mxu0 }
 0x2e9   : > { %3441 = vst [vmem:[%s6134_s20 + $0xb0] sm:$0xff] %v2997_v40  ;;  %v3000_v45 = vadd.f32 %v4402_v12, %v6129_v4  ;;  %v2991_v60 = vpop.f32.mrb[87].mxu0 }
 0x2ea   : > { %3439 = vst [vmem:[%s6134_s20 + $0xa0] sm:$0xff] %v2989_v3  ;;  %v2992_v33 = vadd.f32 %v6129_v4, %v2991_v60 }
 0x2eb   : > { %3442 = vst [vmem:[%s6134_s20 + $0xb8] sm:$0xff] %v3000_v45 }
 0x2ec   : > { %3440 = vst [vmem:[%s6134_s20 + $0xa8] sm:$0xff] %v2992_v33 }
 0x2ee   : > { %v4405_v57 = vpop.f32.mrb[88].mxu0 }
 0x2ef   : > { %v3013_v21 = vadd.f32 %v4405_v57, %v6129_v4  ;;  %v3004_v56 = vpop.f32.mrb[89].mxu0 }
 0x2f0   : > { %v3005_v53 = vadd.f32 %v6129_v4, %v3004_v56  ;;  %v4406_v17 = vpop.f32.mrb[90].mxu0 }
 0x2f1   : > { %3445 = vst [vmem:[%s6134_s20 + $0xd0] sm:$0xff] %v3013_v21  ;;  %v3016_v20 = vadd.f32 %v4406_v17, %v6129_v4  ;;  %v3007_v31 = vpop.f32.mrb[91].mxu0 }
 0x2f2   : > { %3443 = vst [vmem:[%s6134_s20 + $0xc0] sm:$0xff] %v3005_v53  ;;  %v3008_v44 = vadd.f32 %v6129_v4, %v3007_v31 }
 0x2f3   : > { %3446 = vst [vmem:[%s6134_s20 + $0xd8] sm:$0xff] %v3016_v20 }
 0x2f4   : > { %3444 = vst [vmem:[%s6134_s20 + $0xc8] sm:$0xff] %v3008_v44 }
 0x2f6   : > { %v4409_v52 = vpop.f32.mrb[92].mxu0 }
 0x2f7   : > { %v3029_v5 = vadd.f32 %v4409_v52, %v6129_v4  ;;  %v3020_v18 = vpop.f32.mrb[93].mxu0 }
 0x2f8   : > { %v3021_v36 = vadd.f32 %v6129_v4, %v3020_v18  ;;  %v4410_v51 = vpop.f32.mrb[94].mxu0 }
 0x2f9   : > { %3449 = vst [vmem:[%s6134_s20 + $0xf0] sm:$0xff] %v3029_v5  ;;  %v3032_v47 = vadd.f32 %v4410_v51, %v6129_v4  ;;  %v3023_v15 = vpop.f32.mrb[95].mxu0 }
 0x2fa   : > { %3447 = vst [vmem:[%s6134_s20 + $0xe0] sm:$0xff] %v3021_v36  ;;  %v3024_v43 = vadd.f32 %v6129_v4, %v3023_v15 }
 0x2fb   : > { %3450 = vst [vmem:[%s6134_s20 + $0xf8] sm:$0xff] %v3032_v47 }
 0x2fc   : > { %3448 = vst [vmem:[%s6134_s20 + $0xe8] sm:$0xff] %v3024_v43 }
 0x2fe   : > { %v4413_v63 = vpop.f32.mrb[96].mxu0 }
 0x2ff   : > { %v3045_v13 = vadd.f32 %v4413_v63, %v6129_v4  ;;  %v3036_v9 = vpop.f32.mrb[97].mxu0 }
 0x300   : > { %v3037_v11 = vadd.f32 %v6129_v4, %v3036_v9  ;;  %v4414_v6 = vpop.f32.mrb[98].mxu0 }
 0x301   : > { %3453 = vst [vmem:[%s6134_s20 + $0x110] sm:$0xff] %v3045_v13  ;;  %v3048_v46 = vadd.f32 %v4414_v6, %v6129_v4  ;;  %v3039_v7 = vpop.f32.mrb[99].mxu0 }
 0x302   : > { %3451 = vst [vmem:[%s6134_s20 + $0x100] sm:$0xff] %v3037_v11  ;;  %v3040_v26 = vadd.f32 %v6129_v4, %v3039_v7 }
 0x303   : > { %3454 = vst [vmem:[%s6134_s20 + $0x118] sm:$0xff] %v3048_v46 }
 0x304   : > { %3452 = vst [vmem:[%s6134_s20 + $0x108] sm:$0xff] %v3040_v26 }
 0x306   : > { %v4417_v38 = vpop.f32.mrb[100].mxu0 }
 0x307   : > { %v3061_v1 = vadd.f32 %v4417_v38, %v6129_v4  ;;  %v3052_v30 = vpop.f32.mrb[101].mxu0 }
 0x308   : > { %v3053_v61 = vadd.f32 %v6129_v4, %v3052_v30  ;;  %v4418_v23 = vpop.f32.mrb[102].mxu0 }
 0x309   : > { %3457 = vst [vmem:[%s6134_s20 + $0x130] sm:$0xff] %v3061_v1  ;;  %v3064_v35 = vadd.f32 %v4418_v23, %v6129_v4  ;;  %v3055_v58 = vpop.f32.mrb[103].mxu0 }
 0x30a   : > { %3455 = vst [vmem:[%s6134_s20 + $0x120] sm:$0xff] %v3053_v61  ;;  %v3056_v42 = vadd.f32 %v6129_v4, %v3055_v58 }
 0x30b   : > { %3458 = vst [vmem:[%s6134_s20 + $0x138] sm:$0xff] %v3064_v35 }
 0x30c   : > { %3456 = vst [vmem:[%s6134_s20 + $0x128] sm:$0xff] %v3056_v42 }
 0x30e   : > { %v4421_v48 = vpop.f32.mrb[104].mxu0 }
 0x30f   : > { %v3077_v19 = vadd.f32 %v4421_v48, %v6129_v4  ;;  %v3068_v37 = vpop.f32.mrb[105].mxu0 }
 0x310   : > { %v3069_v25 = vadd.f32 %v6129_v4, %v3068_v37  ;;  %v4422_v29 = vpop.f32.mrb[106].mxu0 }
 0x311   : > { %3461 = vst [vmem:[%s6134_s20 + $0x150] sm:$0xff] %v3077_v19  ;;  %v3080_v28 = vadd.f32 %v4422_v29, %v6129_v4  ;;  %v3071_v54 = vpop.f32.mrb[107].mxu0 }
 0x312   : > { %3459 = vst [vmem:[%s6134_s20 + $0x140] sm:$0xff] %v3069_v25  ;;  %v3072_v59 = vadd.f32 %v6129_v4, %v3071_v54 }
 0x313   : > { %3462 = vst [vmem:[%s6134_s20 + $0x158] sm:$0xff] %v3080_v28 }
 0x314   : > { %3460 = vst [vmem:[%s6134_s20 + $0x148] sm:$0xff] %v3072_v59 }
 0x316   : > { %v4425_v0 = vpop.f32.mrb[108].mxu0 }
 0x317   : > { %v3093_v8 = vadd.f32 %v4425_v0, %v6129_v4  ;;  %v3084_v27 = vpop.f32.mrb[109].mxu0 }
 0x318   : > { %v3085_v34 = vadd.f32 %v6129_v4, %v3084_v27  ;;  %v4426_v41 = vpop.f32.mrb[110].mxu0 }
 0x319   : > { %3465 = vst [vmem:[%s6134_s20 + $0x170] sm:$0xff] %v3093_v8  ;;  %v3096_v49 = vadd.f32 %v4426_v41, %v6129_v4  ;;  %v3087_v10 = vpop.f32.mrb[111].mxu0 }
 0x31a   : > { %3463 = vst [vmem:[%s6134_s20 + $0x160] sm:$0xff] %v3085_v34  ;;  %v3088_v14 = vadd.f32 %v6129_v4, %v3087_v10 }
 0x31b   : > { %3466 = vst [vmem:[%s6134_s20 + $0x178] sm:$0xff] %v3096_v49 }
 0x31c   : > { %3464 = vst [vmem:[%s6134_s20 + $0x168] sm:$0xff] %v3088_v14 }
 0x31e   : > { %v4429_v39 = vpop.f32.mrb[112].mxu0 }
 0x31f   : > { %v3109_v16 = vadd.f32 %v4429_v39, %v6129_v4  ;;  %v3100_v24 = vpop.f32.mrb[113].mxu0 }
 0x320   : > { %v3101_v2 = vadd.f32 %v6129_v4, %v3100_v24  ;;  %v4430_v22 = vpop.f32.mrb[114].mxu0 }
 0x321   : > { %3469 = vst [vmem:[%s6134_s20 + $0x190] sm:$0xff] %v3109_v16  ;;  %v3112_v62 = vadd.f32 %v4430_v22, %v6129_v4  ;;  %v3103_v55 = vpop.f32.mrb[115].mxu0 }
 0x322   : > { %3467 = vst [vmem:[%s6134_s20 + $0x180] sm:$0xff] %v3101_v2  ;;  %v3104_v32 = vadd.f32 %v6129_v4, %v3103_v55 }
 0x323   : > { %3470 = vst [vmem:[%s6134_s20 + $0x198] sm:$0xff] %v3112_v62 }
 0x324   : > { %3468 = vst [vmem:[%s6134_s20 + $0x188] sm:$0xff] %v3104_v32 }
 0x326   : > { %v4433_v40 = vpop.f32.mrb[116].mxu0 }
 0x327   : > { %v3125_v50 = vadd.f32 %v4433_v40, %v6129_v4  ;;  %v3116_v3 = vpop.f32.mrb[117].mxu0 }
 0x328   : > { %v3117_v12 = vadd.f32 %v6129_v4, %v3116_v3  ;;  %v4434_v45 = vpop.f32.mrb[118].mxu0 }
 0x329   : > { %3473 = vst [vmem:[%s6134_s20 + $0x1b0] sm:$0xff] %v3125_v50  ;;  %v3128_v60 = vadd.f32 %v4434_v45, %v6129_v4  ;;  %v3119_v33 = vpop.f32.mrb[119].mxu0 }
 0x32a   : > { %3471 = vst [vmem:[%s6134_s20 + $0x1a0] sm:$0xff] %v3117_v12  ;;  %v3120_v57 = vadd.f32 %v6129_v4, %v3119_v33 }
 0x32b   : > { %3474 = vst [vmem:[%s6134_s20 + $0x1b8] sm:$0xff] %v3128_v60 }
 0x32c   : > { %3472 = vst [vmem:[%s6134_s20 + $0x1a8] sm:$0xff] %v3120_v57 }
 0x32e   : > { %v4437_v21 = vpop.f32.mrb[120].mxu0 }
 0x32f   : > { %v3141_v56 = vadd.f32 %v4437_v21, %v6129_v4  ;;  %v3132_v53 = vpop.f32.mrb[121].mxu0 }
 0x330   : > { %v3133_v17 = vadd.f32 %v6129_v4, %v3132_v53  ;;  %v4438_v20 = vpop.f32.mrb[122].mxu0 }
 0x331   : > { %3477 = vst [vmem:[%s6134_s20 + $0x1d0] sm:$0xff] %v3141_v56  ;;  %v3144_v31 = vadd.f32 %v4438_v20, %v6129_v4  ;;  %v3135_v44 = vpop.f32.mrb[123].mxu0 }
 0x332   : > { %3475 = vst [vmem:[%s6134_s20 + $0x1c0] sm:$0xff] %v3133_v17  ;;  %v3136_v52 = vadd.f32 %v6129_v4, %v3135_v44 }
 0x333   : > { %3478 = vst [vmem:[%s6134_s20 + $0x1d8] sm:$0xff] %v3144_v31 }
 0x334   : > { %3476 = vst [vmem:[%s6134_s20 + $0x1c8] sm:$0xff] %v3136_v52 }
 0x336   : > { %v4441_v5 = vpop.f32.mrb[124].mxu0 }
 0x337   : > { %v3157_v18 = vadd.f32 %v4441_v5, %v6129_v4  ;;  %v3148_v36 = vpop.f32.mrb[125].mxu0 }
 0x338   : > { %v3149_v51 = vadd.f32 %v6129_v4, %v3148_v36  ;;  %v4442_v47 = vpop.f32.mrb[126].mxu0 }
 0x339   : > { %3481 = vst [vmem:[%s6134_s20 + $0x1f0] sm:$0xff] %v3157_v18  ;;  %v3160_v15 = vadd.f32 %v4442_v47, %v6129_v4  ;;  %v3151_v43 = vpop.f32.mrb[127].mxu0 }
 0x33a   : > { %3479 = vst [vmem:[%s6134_s20 + $0x1e0] sm:$0xff] %v3149_v51  ;;  %v3152_v63 = vadd.f32 %v6129_v4, %v3151_v43 }
 0x33b   : > { %3482 = vst [vmem:[%s6134_s20 + $0x1f8] sm:$0xff] %v3160_v15 }
 0x33c   : > { %3480 = vst [vmem:[%s6134_s20 + $0x1e8] sm:$0xff] %v3152_v63 }
 0x33e   : > { %v4445_v13 = vpop.f32.mrb[128].mxu0 }
 0x33f   : > { %v3173_v9 = vadd.f32 %v4445_v13, %v6129_v4  ;;  %v3164_v11 = vpop.f32.mrb[129].mxu0 }
 0x340   : > { %v3165_v6 = vadd.f32 %v6129_v4, %v3164_v11  ;;  %v4446_v46 = vpop.f32.mrb[130].mxu0 }
 0x341   : > { %3485 = vst [vmem:[%s6134_s20 + $0x210] sm:$0xff] %v3173_v9  ;;  %v3176_v7 = vadd.f32 %v4446_v46, %v6129_v4  ;;  %v3167_v26 = vpop.f32.mrb[131].mxu0 }
 0x342   : > { %3483 = vst [vmem:[%s6134_s20 + $0x200] sm:$0xff] %v3165_v6  ;;  %v3168_v38 = vadd.f32 %v6129_v4, %v3167_v26 }
 0x343   : > { %3486 = vst [vmem:[%s6134_s20 + $0x218] sm:$0xff] %v3176_v7 }
 0x344   : > { %3484 = vst [vmem:[%s6134_s20 + $0x208] sm:$0xff] %v3168_v38 }
 0x346   : > { %v4449_v1 = vpop.f32.mrb[132].mxu0 }
 0x347   : > { %v3189_v30 = vadd.f32 %v4449_v1, %v6129_v4  ;;  %v3180_v61 = vpop.f32.mrb[133].mxu0 }
 0x348   : > { %v3181_v23 = vadd.f32 %v6129_v4, %v3180_v61  ;;  %v4450_v35 = vpop.f32.mrb[134].mxu0 }
 0x349   : > { %3489 = vst [vmem:[%s6134_s20 + $0x230] sm:$0xff] %v3189_v30  ;;  %v3192_v58 = vadd.f32 %v4450_v35, %v6129_v4  ;;  %v3183_v42 = vpop.f32.mrb[135].mxu0 }
 0x34a   : > { %3487 = vst [vmem:[%s6134_s20 + $0x220] sm:$0xff] %v3181_v23  ;;  %v3184_v48 = vadd.f32 %v6129_v4, %v3183_v42 }
 0x34b   : > { %3490 = vst [vmem:[%s6134_s20 + $0x238] sm:$0xff] %v3192_v58 }
 0x34c   : > { %3488 = vst [vmem:[%s6134_s20 + $0x228] sm:$0xff] %v3184_v48 }
 0x34e   : > { %v4453_v19 = vpop.f32.mrb[136].mxu0 }
 0x34f   : > { %v3205_v37 = vadd.f32 %v4453_v19, %v6129_v4  ;;  %v3196_v25 = vpop.f32.mrb[137].mxu0 }
 0x350   : > { %v3197_v29 = vadd.f32 %v6129_v4, %v3196_v25  ;;  %v4454_v28 = vpop.f32.mrb[138].mxu0 }
 0x351   : > { %3493 = vst [vmem:[%s6134_s20 + $0x250] sm:$0xff] %v3205_v37  ;;  %v3208_v54 = vadd.f32 %v4454_v28, %v6129_v4  ;;  %v3199_v59 = vpop.f32.mrb[139].mxu0 }
 0x352   : > { %3491 = vst [vmem:[%s6134_s20 + $0x240] sm:$0xff] %v3197_v29  ;;  %v3200_v0 = vadd.f32 %v6129_v4, %v3199_v59 }
 0x353   : > { %3494 = vst [vmem:[%s6134_s20 + $0x258] sm:$0xff] %v3208_v54 }
 0x354   : > { %3492 = vst [vmem:[%s6134_s20 + $0x248] sm:$0xff] %v3200_v0 }
 0x356   : > { %v4457_v8 = vpop.f32.mrb[140].mxu0 }
 0x357   : > { %v3221_v27 = vadd.f32 %v4457_v8, %v6129_v4  ;;  %v3212_v34 = vpop.f32.mrb[141].mxu0 }
 0x358   : > { %v3213_v41 = vadd.f32 %v6129_v4, %v3212_v34  ;;  %v4458_v49 = vpop.f32.mrb[142].mxu0 }
 0x359   : > { %3497 = vst [vmem:[%s6134_s20 + $0x270] sm:$0xff] %v3221_v27  ;;  %v3224_v10 = vadd.f32 %v4458_v49, %v6129_v4  ;;  %v3215_v14 = vpop.f32.mrb[143].mxu0 }
 0x35a   : > { %3495 = vst [vmem:[%s6134_s20 + $0x260] sm:$0xff] %v3213_v41  ;;  %v3216_v39 = vadd.f32 %v6129_v4, %v3215_v14 }
 0x35b   : > { %3498 = vst [vmem:[%s6134_s20 + $0x278] sm:$0xff] %v3224_v10 }
 0x35c   : > { %3496 = vst [vmem:[%s6134_s20 + $0x268] sm:$0xff] %v3216_v39 }
 0x35e   : > { %v4461_v16 = vpop.f32.mrb[144].mxu0 }
 0x35f   : > { %v3237_v24 = vadd.f32 %v4461_v16, %v6129_v4  ;;  %v3228_v2 = vpop.f32.mrb[145].mxu0 }
 0x360   : > { %v3229_v22 = vadd.f32 %v6129_v4, %v3228_v2  ;;  %v4462_v62 = vpop.f32.mrb[146].mxu0 }
 0x361   : > { %3501 = vst [vmem:[%s6134_s20 + $0x290] sm:$0xff] %v3237_v24  ;;  %v3240_v55 = vadd.f32 %v4462_v62, %v6129_v4  ;;  %v3231_v32 = vpop.f32.mrb[147].mxu0 }
 0x362   : > { %3499 = vst [vmem:[%s6134_s20 + $0x280] sm:$0xff] %v3229_v22  ;;  %v3232_v40 = vadd.f32 %v6129_v4, %v3231_v32 }
 0x363   : > { %3502 = vst [vmem:[%s6134_s20 + $0x298] sm:$0xff] %v3240_v55 }
 0x364   : > { %3500 = vst [vmem:[%s6134_s20 + $0x288] sm:$0xff] %v3232_v40 }
 0x366   : > { %v4465_v50 = vpop.f32.mrb[148].mxu0 }
 0x367   : > { %v3253_v3 = vadd.f32 %v4465_v50, %v6129_v4  ;;  %v3244_v12 = vpop.f32.mrb[149].mxu0 }
 0x368   : > { %v3245_v45 = vadd.f32 %v6129_v4, %v3244_v12  ;;  %v4466_v60 = vpop.f32.mrb[150].mxu0 }
 0x369   : > { %3505 = vst [vmem:[%s6134_s20 + $0x2b0] sm:$0xff] %v3253_v3  ;;  %v3256_v33 = vadd.f32 %v4466_v60, %v6129_v4  ;;  %v3247_v57 = vpop.f32.mrb[151].mxu0 }
 0x36a   : > { %3503 = vst [vmem:[%s6134_s20 + $0x2a0] sm:$0xff] %v3245_v45  ;;  %v3248_v21 = vadd.f32 %v6129_v4, %v3247_v57 }
 0x36b   : > { %3506 = vst [vmem:[%s6134_s20 + $0x2b8] sm:$0xff] %v3256_v33 }
 0x36c   : > { %3504 = vst [vmem:[%s6134_s20 + $0x2a8] sm:$0xff] %v3248_v21 }
 0x36e   : > { %v4469_v56 = vpop.f32.mrb[152].mxu0 }
 0x36f   : > { %v3269_v53 = vadd.f32 %v4469_v56, %v6129_v4  ;;  %v3260_v17 = vpop.f32.mrb[153].mxu0 }
 0x370   : > { %v3261_v20 = vadd.f32 %v6129_v4, %v3260_v17  ;;  %v4470_v31 = vpop.f32.mrb[154].mxu0 }
 0x371   : > { %3509 = vst [vmem:[%s6134_s20 + $0x2d0] sm:$0xff] %v3269_v53  ;;  %v3272_v44 = vadd.f32 %v4470_v31, %v6129_v4  ;;  %v3263_v52 = vpop.f32.mrb[155].mxu0 }
 0x372   : > { %3507 = vst [vmem:[%s6134_s20 + $0x2c0] sm:$0xff] %v3261_v20  ;;  %v3264_v5 = vadd.f32 %v6129_v4, %v3263_v52 }
 0x373   : > { %3510 = vst [vmem:[%s6134_s20 + $0x2d8] sm:$0xff] %v3272_v44 }
 0x374   : > { %3508 = vst [vmem:[%s6134_s20 + $0x2c8] sm:$0xff] %v3264_v5 }
 0x376   : > { %v4473_v18 = vpop.f32.mrb[156].mxu0 }
 0x377   : > { %v3285_v36 = vadd.f32 %v4473_v18, %v6129_v4  ;;  %v3276_v51 = vpop.f32.mrb[157].mxu0 }
 0x378   : > { %v3277_v47 = vadd.f32 %v6129_v4, %v3276_v51  ;;  %v4474_v15 = vpop.f32.mrb[158].mxu0 }
 0x379   : > { %3513 = vst [vmem:[%s6134_s20 + $0x2f0] sm:$0xff] %v3285_v36  ;;  %v3288_v43 = vadd.f32 %v4474_v15, %v6129_v4  ;;  %v3279_v63 = vpop.f32.mrb[159].mxu0 }
 0x37a   : > { %3511 = vst [vmem:[%s6134_s20 + $0x2e0] sm:$0xff] %v3277_v47  ;;  %v3280_v13 = vadd.f32 %v6129_v4, %v3279_v63 }
 0x37b   : > { %3514 = vst [vmem:[%s6134_s20 + $0x2f8] sm:$0xff] %v3288_v43 }
 0x37c   : > { %3512 = vst [vmem:[%s6134_s20 + $0x2e8] sm:$0xff] %v3280_v13 }
 0x37e   : > { %v4477_v9 = vpop.f32.mrb[160].mxu0 }
 0x37f   : > { %v3301_v11 = vadd.f32 %v4477_v9, %v6129_v4  ;;  %v3292_v6 = vpop.f32.mrb[161].mxu0 }
 0x380   : > { %v3293_v46 = vadd.f32 %v6129_v4, %v3292_v6  ;;  %v4478_v7 = vpop.f32.mrb[162].mxu0 }
 0x381   : > { %3517 = vst [vmem:[%s6134_s20 + $0x310] sm:$0xff] %v3301_v11  ;;  %v3304_v26 = vadd.f32 %v4478_v7, %v6129_v4  ;;  %v3295_v38 = vpop.f32.mrb[163].mxu0 }
 0x382   : > { %3515 = vst [vmem:[%s6134_s20 + $0x300] sm:$0xff] %v3293_v46  ;;  %v3296_v1 = vadd.f32 %v6129_v4, %v3295_v38 }
 0x383   : > { %3518 = vst [vmem:[%s6134_s20 + $0x318] sm:$0xff] %v3304_v26 }
 0x384   : > { %3516 = vst [vmem:[%s6134_s20 + $0x308] sm:$0xff] %v3296_v1 }
 0x386   : > { %v4481_v30 = vpop.f32.mrb[164].mxu0 }
 0x387   : > { %v3317_v61 = vadd.f32 %v4481_v30, %v6129_v4  ;;  %v3308_v23 = vpop.f32.mrb[165].mxu0 }
 0x388   : > { %v3309_v35 = vadd.f32 %v6129_v4, %v3308_v23  ;;  %v4482_v58 = vpop.f32.mrb[166].mxu0 }
 0x389   : > { %3521 = vst [vmem:[%s6134_s20 + $0x330] sm:$0xff] %v3317_v61  ;;  %v3320_v42 = vadd.f32 %v4482_v58, %v6129_v4  ;;  %v3311_v48 = vpop.f32.mrb[167].mxu0 }
 0x38a   : > { %3519 = vst [vmem:[%s6134_s20 + $0x320] sm:$0xff] %v3309_v35  ;;  %v3312_v19 = vadd.f32 %v6129_v4, %v3311_v48 }
 0x38b   : > { %3522 = vst [vmem:[%s6134_s20 + $0x338] sm:$0xff] %v3320_v42 }
 0x38c   : > { %3520 = vst [vmem:[%s6134_s20 + $0x328] sm:$0xff] %v3312_v19 }
 0x38e   : > { %v4485_v37 = vpop.f32.mrb[168].mxu0 }
 0x38f   : > { %v3333_v25 = vadd.f32 %v4485_v37, %v6129_v4  ;;  %v3324_v29 = vpop.f32.mrb[169].mxu0 }
 0x390   : > { %v3325_v28 = vadd.f32 %v6129_v4, %v3324_v29  ;;  %v4486_v54 = vpop.f32.mrb[170].mxu0 }
 0x391   : > { %3525 = vst [vmem:[%s6134_s20 + $0x350] sm:$0xff] %v3333_v25  ;;  %v3336_v59 = vadd.f32 %v4486_v54, %v6129_v4  ;;  %v3327_v0 = vpop.f32.mrb[171].mxu0 }
 0x392   : > { %3523 = vst [vmem:[%s6134_s20 + $0x340] sm:$0xff] %v3325_v28  ;;  %v3328_v8 = vadd.f32 %v6129_v4, %v3327_v0 }
 0x393   : > { %3526 = vst [vmem:[%s6134_s20 + $0x358] sm:$0xff] %v3336_v59 }
 0x394   : > { %3524 = vst [vmem:[%s6134_s20 + $0x348] sm:$0xff] %v3328_v8 }
 0x396   : > { %v4489_v27 = vpop.f32.mrb[172].mxu0 }
 0x397   : > { %v3349_v34 = vadd.f32 %v4489_v27, %v6129_v4  ;;  %v3340_v41 = vpop.f32.mrb[173].mxu0 }
 0x398   : > { %v3341_v49 = vadd.f32 %v6129_v4, %v3340_v41  ;;  %v4490_v10 = vpop.f32.mrb[174].mxu0 }
 0x399   : > { %3529 = vst [vmem:[%s6134_s20 + $0x370] sm:$0xff] %v3349_v34  ;;  %v3352_v14 = vadd.f32 %v4490_v10, %v6129_v4  ;;  %v3343_v39 = vpop.f32.mrb[175].mxu0 }
 0x39a   : > { %3527 = vst [vmem:[%s6134_s20 + $0x360] sm:$0xff] %v3341_v49  ;;  %v3344_v16 = vadd.f32 %v6129_v4, %v3343_v39 }
 0x39b   : > { %3530 = vst [vmem:[%s6134_s20 + $0x378] sm:$0xff] %v3352_v14 }
 0x39c   : > { %3528 = vst [vmem:[%s6134_s20 + $0x368] sm:$0xff] %v3344_v16 }
 0x39e   : > { %v4493_v24 = vpop.f32.mrb[176].mxu0 }
 0x39f   : > { %v3365_v2 = vadd.f32 %v4493_v24, %v6129_v4  ;;  %v3356_v22 = vpop.f32.mrb[177].mxu0 }
 0x3a0   : > { %v3357_v62 = vadd.f32 %v6129_v4, %v3356_v22  ;;  %v4494_v55 = vpop.f32.mrb[178].mxu0 }
 0x3a1   : > { %3533 = vst [vmem:[%s6134_s20 + $0x390] sm:$0xff] %v3365_v2  ;;  %v3368_v32 = vadd.f32 %v4494_v55, %v6129_v4  ;;  %v3359_v40 = vpop.f32.mrb[179].mxu0 }
 0x3a2   : > { %3531 = vst [vmem:[%s6134_s20 + $0x380] sm:$0xff] %v3357_v62  ;;  %v3360_v50 = vadd.f32 %v6129_v4, %v3359_v40 }
 0x3a3   : > { %3534 = vst [vmem:[%s6134_s20 + $0x398] sm:$0xff] %v3368_v32 }
 0x3a4   : > { %3532 = vst [vmem:[%s6134_s20 + $0x388] sm:$0xff] %v3360_v50 }
 0x3a6   : > { %v4497_v3 = vpop.f32.mrb[180].mxu0 }
 0x3a7   : > { %v3381_v12 = vadd.f32 %v4497_v3, %v6129_v4  ;;  %v3372_v45 = vpop.f32.mrb[181].mxu0 }
 0x3a8   : > { %v3373_v60 = vadd.f32 %v6129_v4, %v3372_v45  ;;  %v4498_v33 = vpop.f32.mrb[182].mxu0 }
 0x3a9   : > { %3537 = vst [vmem:[%s6134_s20 + $0x3b0] sm:$0xff] %v3381_v12  ;;  %v3384_v57 = vadd.f32 %v4498_v33, %v6129_v4  ;;  %v3375_v21 = vpop.f32.mrb[183].mxu0 }
 0x3aa   : > { %3535 = vst [vmem:[%s6134_s20 + $0x3a0] sm:$0xff] %v3373_v60  ;;  %v3376_v56 = vadd.f32 %v6129_v4, %v3375_v21 }
 0x3ab   : > { %3538 = vst [vmem:[%s6134_s20 + $0x3b8] sm:$0xff] %v3384_v57 }
 0x3ac   : > { %3536 = vst [vmem:[%s6134_s20 + $0x3a8] sm:$0xff] %v3376_v56 }
 0x3ae   : > { %v4501_v53 = vpop.f32.mrb[184].mxu0 }
 0x3af   : > { %v3397_v17 = vadd.f32 %v4501_v53, %v6129_v4  ;;  %v3388_v20 = vpop.f32.mrb[185].mxu0 }
 0x3b0   : > { %v3389_v31 = vadd.f32 %v6129_v4, %v3388_v20  ;;  %v4502_v44 = vpop.f32.mrb[186].mxu0 }
 0x3b1   : > { %3541 = vst [vmem:[%s6134_s20 + $0x3d0] sm:$0xff] %v3397_v17  ;;  %v3400_v52 = vadd.f32 %v4502_v44, %v6129_v4  ;;  %v3391_v5 = vpop.f32.mrb[187].mxu0 }
 0x3b2   : > { %3539 = vst [vmem:[%s6134_s20 + $0x3c0] sm:$0xff] %v3389_v31  ;;  %v3392_v18 = vadd.f32 %v6129_v4, %v3391_v5 }
 0x3b3   : > { %3542 = vst [vmem:[%s6134_s20 + $0x3d8] sm:$0xff] %v3400_v52 }
 0x3b4   : > { %3540 = vst [vmem:[%s6134_s20 + $0x3c8] sm:$0xff] %v3392_v18 }
 0x3b6   : > { %v4505_v36 = vpop.f32.mrb[188].mxu0 }
 0x3b7   : > { %v3413_v51 = vadd.f32 %v4505_v36, %v6129_v4  ;;  %v3404_v47 = vpop.f32.mrb[189].mxu0 }
 0x3b8   : > { %v3405_v15 = vadd.f32 %v6129_v4, %v3404_v47  ;;  %v4506_v43 = vpop.f32.mrb[190].mxu0 }
 0x3b9   : > { %3545 = vst [vmem:[%s6134_s20 + $0x3f0] sm:$0xff] %v3413_v51  ;;  %v3416_v63 = vadd.f32 %v4506_v43, %v6129_v4  ;;  %v3407_v13 = vpop.f32.mrb[191].mxu0 }
 0x3ba   : > { %3543 = vst [vmem:[%s6134_s20 + $0x3e0] sm:$0xff] %v3405_v15  ;;  %v3408_v9 = vadd.f32 %v6129_v4, %v3407_v13 }
 0x3bb   : > { %3546 = vst [vmem:[%s6134_s20 + $0x3f8] sm:$0xff] %v3416_v63 }
 0x3bc   : > { %3544 = vst [vmem:[%s6134_s20 + $0x3e8] sm:$0xff] %v3408_v9 }
 0x3bd   : > { %5150 = shalt.err (!%p5147_p3)
}
 0x3be   : > { %s5151_s16 = scalar_lea.hbm %s6412_s8, 16384  ;;  %s5155_s19 = scalar_lea.hbm %s6470_s7, 32768 }
 0x3bf   : > { %p5152_p4 = scmp.ne.s32.totalorder %s6412_s8, %s5151_s16  ;;  %p5156_p9 = scmp.lt.u32.totalorder %s6412_s8, %s6470_s7 }
 0x3c0   : > { %p5157_p10 = scmp.lt.u32.totalorder %s5155_s19, %s5151_s16  ;;  %p5159_p12 = scmp.lt.u32.totalorder %s5151_s16, %s6412_s8 }
 0x3c1   : > { %p5153_p7 = pnand %p5152_p4, %p5282_p5 }
 0x3c2   : > { %p5158_p11 = por %p5157_p10, %p5156_p9 }
 0x3c3   : > { %p5154_p8 = pneg %p5153_p7 }
 0x3c4   : > { %p5160_p13 = por %p5159_p12, %p5158_p11 }
 0x3c6   : > { %p5161_p0 = pnand %p5160_p13, %p5154_p8 }
 0x3c8   : > { %5164 = shalt.err (!%p5161_p0)
}
 0x3c9   : > { %s5202_s23 = smov 128   ;;  %s5203_s29 = smov 8  }
 0x3ca   : > { %4509 = dma.vmem_to_hbm [thread:$0]  (%p5282_p5), %s6414_s22, 16384, %s6412_s8, %s6422_s28, %s5202_s23, %s5202_s23, %s5203_s29  }
 0x3cb PF: > { %p4515_p1 = scmp.ge.s32.totalorder %s5199_s27, 2  ;;  %s3576_s9 = sand.u32 1, %s5187_s24  }
 0x3cc   : > { %s3577_s13 = scalar_lea.sflag [#allocation3], %s3576_s9 }
 0x3cd   : > { %p4512_p2 = pnand %p4515_p1, %p5286_p6 }
 0x3cf   : > { %5182 = dma.done.wait (!%p4512_p2), %s3577_s13, 16384  }
 0x3d0   : > { %5184 = vsyncadd (!%p4512_p2), %s3577_s13, 4294950912  ;;  %p17_p3 = scmp.ge.s32.totalorder %s5269_s30, 4   ;;  %s6504_s24 = smov %s5191_s25 }
 0x3d1   : > { %s6505_s25 = smov %s5195_s26  ;;  %s6506_s26 = smov %s5280_s10 }
 0x3d2   : > { %s6507_s27 = smov %s5269_s30  ;;  %19 = sbr.rel (!%p17_p3) target bundleno = 3 (0x3), region = 83 }
 0x3d9   :  { %3582 = vsyncpa [#allocation3], 1 }
 0x3da   :  { %3584 = vsyncpa [#allocation3 + $0x1], 1 }

</bundles_post_ra>
